<compile_context>
chip_gen: v5e
topology: v5e:2x2
jax: 0.10.0
libtpu: 0.0.40
codegen_flags: <defaults>
</compile_context>

<pallas_src>
import jax
import jax.numpy as jnp
from jax.experimental import pallas as pl
from jax.experimental.pallas import tpu as pltpu

NB_MOVIES = 256            # synthetic "nb_movies"
H1, H2, HZ = 512, 80, 32   # fixed by the module definition
LANE = 128                 # lane-padded width for the sub-128 layers
DROP_P = 0.9               # nn.Dropout(0.9); module defaults to training mode


def _dot(x, w_ref, b_ref):
    """bf16 MXU matmul with f32 accumulation + f32 bias."""
    return jnp.dot(x.astype(jnp.bfloat16), w_ref[...],
                   preferred_element_type=jnp.float32) + b_ref[...]


def vae_kernel(x_ref, mask_ref, eps_ref,
               we1_ref, be1_ref, we2_ref, be2_ref,
               wml_ref, bml_ref,
               wd1_ref, bd1_ref, wd2_ref, bd2_ref, wd3_ref, bd3_ref,
               recon_ref, mulv_ref):
    B = eps_ref.shape[0]
    x = x_ref[...]

    # Shared first encoder layer, computed once.
    h = jax.nn.sigmoid(_dot(x, we1_ref, be1_ref))              # (B, 512)

    # Two independent inverted-dropout masks (pre-scaled by 1/(1-p)),
    # applied on a row-stacked copy so the next dot runs once on (2B, 512).
    hd = jnp.concatenate([h, h], axis=0) * mask_ref[...]       # (2B, 512)

    # Second encoder layer (output lanes padded 80 -> 128; pad lanes = 0.5
    # after the sigmoid but hit zero weight rows in the next layer).
    s2 = jax.nn.sigmoid(_dot(hd, we2_ref, be2_ref))            # (2B, 128)

    # fc1 | fc2 fused: W = [wmu | wlv] padded to (128, 128).
    #   rows 0..B-1, lanes 0..31  -> mu  = out1 @ wmu + bmu
    #   rows B..2B-1, lanes 32..63 -> logvar = out2 @ wlv + blv
    R = _dot(s2, wml_ref, bml_ref)                             # (2B, 128)
    mulv_ref[...] = R

    mu = R[:B, 0:HZ]                                           # (B, 32)
    logvar = R[B:, HZ:2 * HZ]                                  # (B, 32)

    # reparameterize: z = mu + eps * exp(logvar / 2)
    z = mu + eps_ref[...] * jnp.exp(logvar * 0.5)              # (B, 32)

    # Decoder (lane-padded internally, final layer is lane-dense 256 wide).
    d = jax.nn.sigmoid(_dot(z, wd1_ref, bd1_ref))              # (B, 128)
    d = jax.nn.sigmoid(_dot(d, wd2_ref, bd2_ref))              # (B, 512)
    recon_ref[...] = _dot(d, wd3_ref, bd3_ref)                 # (B, 256)


def init_params(key, nb_movies=NB_MOVIES):
    """PyTorch-style init (uniform +/- 1/sqrt(fan_in)); weights stored [in, out],
    then lane-padded to 128 where needed and cast to bf16. Biases stay f32."""
    def linear(k, fan_in, fan_out):
        kw, kb = jax.random.split(k)
        bound = 1.0 / (fan_in ** 0.5)
        w = jax.random.uniform(kw, (fan_in, fan_out), jnp.float32, -bound, bound)
        b = jax.random.uniform(kb, (1, fan_out), jnp.float32, -bound, bound)
        return w, b

    keys = jax.random.split(key, 7)
    we1, be1 = linear(keys[0], nb_movies, H1)   # encoder[0]
    we2, be2 = linear(keys[1], H1, H2)          # encoder[3]
    wmu, bmu = linear(keys[2], H2, HZ)          # fc1
    wlv, blv = linear(keys[3], H2, HZ)          # fc2
    wd1, bd1 = linear(keys[4], HZ, H2)          # decoder[0]
    wd2, bd2 = linear(keys[5], H2, H1)          # decoder[2]
    wd3, bd3 = linear(keys[6], H1, nb_movies)   # decoder[4]

    def pad_w(w, rows, cols):
        return jnp.zeros((rows, cols), w.dtype).at[:w.shape[0], :w.shape[1]].set(w)

    def pad_b(b, cols):
        return jnp.zeros((1, cols), b.dtype).at[:, :b.shape[1]].set(b)

    we2p, be2p = pad_w(we2, H1, LANE), pad_b(be2, LANE)          # (512,128)
    wml = jnp.concatenate([wmu, wlv], axis=1)                    # (80, 64)
    bml = jnp.concatenate([bmu, blv], axis=1)                    # (1, 64)
    wmlp, bmlp = pad_w(wml, LANE, LANE), pad_b(bml, LANE)        # (128,128)
    wd1p, bd1p = pad_w(wd1, HZ, LANE), pad_b(bd1, LANE)          # (32, 128)
    wd2p = pad_w(wd2, LANE, H1)                                  # (128,512)

    bf16 = jnp.bfloat16
    return [we1.astype(bf16), be1,
            we2p.astype(bf16), be2p,
            wmlp.astype(bf16), bmlp,
            wd1p.astype(bf16), bd1p,
            wd2p.astype(bf16), bd2,
            wd3.astype(bf16), bd3]


def vae_forward(x, dropout_mask, eps, params):
    B = x.shape[0]
    vmem = pl.BlockSpec(memory_space=pltpu.MemorySpace.VMEM)
    recon, mulv = pl.pallas_call(
        vae_kernel,
        out_shape=(
            jax.ShapeDtypeStruct((B, NB_MOVIES), jnp.float32),   # decoder(z)
            jax.ShapeDtypeStruct((2 * B, LANE), jnp.float32),    # [mu | logvar] slab
        ),
        in_specs=[vmem] * (3 + len(params)),
        out_specs=(vmem, vmem),
    )(x, dropout_mask, eps, *params)
    mu = mulv[:B, :HZ]
    logvar = mulv[B:, HZ:2 * HZ]
    return recon, mu, logvar


if __name__ == "__main__":
    key = jax.random.PRNGKey(0)
    k_params, k_x, k_eps, k_drop = jax.random.split(key, 4)

    B = 8
    params = init_params(k_params)
    x = jax.random.uniform(k_x, (B, NB_MOVIES), jnp.float32)   # ratings-like input
    eps = jax.random.normal(k_eps, (B, HZ), jnp.float32)       # reparam noise (torch.randn)

    # Training-mode Dropout(0.9): two independent keep-masks (one per encoder
    # call), pre-scaled by 1/(1-p) (PyTorch inverted dropout), stacked as (2B, 512).
    keep = jax.random.bernoulli(k_drop, 1.0 - DROP_P, (2 * B, H1))
    dropout_mask = keep.astype(jnp.float32) * (1.0 / (1.0 - DROP_P))

    recon, mu, logvar = vae_forward(x, dropout_mask, eps, params)
    jax.block_until_ready((recon, mu, logvar))

    assert recon.shape == (B, NB_MOVIES) and mu.shape == (B, HZ) and logvar.shape == (B, HZ)
    assert jnp.all(jnp.isfinite(recon)) and jnp.all(jnp.isfinite(mu)) and jnp.all(jnp.isfinite(logvar))
    print("KERNEL_OK")
</pallas_src>

<mosaic_0001>
module attributes {stable_mosaic.version = 11 : i64} {
  func.func @vae_kernel(%arg0: memref<8x256xf32, #tpu.memory_space<vmem>>, %arg1: memref<16x512xf32, #tpu.memory_space<vmem>>, %arg2: memref<8x32xf32, #tpu.memory_space<vmem>>, %arg3: memref<256x512xbf16, #tpu.memory_space<vmem>>, %arg4: memref<1x512xf32, #tpu.memory_space<vmem>>, %arg5: memref<512x128xbf16, #tpu.memory_space<vmem>>, %arg6: memref<1x128xf32, #tpu.memory_space<vmem>>, %arg7: memref<128x128xbf16, #tpu.memory_space<vmem>>, %arg8: memref<1x128xf32, #tpu.memory_space<vmem>>, %arg9: memref<32x128xbf16, #tpu.memory_space<vmem>>, %arg10: memref<1x128xf32, #tpu.memory_space<vmem>>, %arg11: memref<128x512xbf16, #tpu.memory_space<vmem>>, %arg12: memref<1x512xf32, #tpu.memory_space<vmem>>, %arg13: memref<512x256xbf16, #tpu.memory_space<vmem>>, %arg14: memref<1x256xf32, #tpu.memory_space<vmem>>, %arg15: memref<8x256xf32, #tpu.memory_space<vmem>>, %arg16: memref<16x128xf32, #tpu.memory_space<vmem>>) attributes {dimension_semantics = [], scalar_prefetch = 0 : i64, scratch_operands = 0 : i64, tpu.core_type = #tpu.core_type<tc>} {
    %c0 = arith.constant 0 : index
    %c0_0 = arith.constant 0 : index
    %0 = vector.load %arg0[%c0, %c0_0] : memref<8x256xf32, #tpu.memory_space<vmem>>, vector<8x256xf32>
    %1 = arith.truncf %0 : vector<8x256xf32> to vector<8x256xbf16>
    %c0_1 = arith.constant 0 : index
    %c0_2 = arith.constant 0 : index
    %2 = vector.load %arg3[%c0_1, %c0_2] : memref<256x512xbf16, #tpu.memory_space<vmem>>, vector<256x512xbf16>
    %cst = arith.constant dense<0.000000e+00> : vector<8x512xf32>
    %3 = tpu.matmul %1, %2, %cst {dimension_numbers = #tpu.dot_dimension_numbers<[1], [0], [0], [1], [0, 0, 1, 1], [], []>} : vector<8x256xbf16>, vector<256x512xbf16>, vector<8x512xf32> -> vector<8x512xf32>
    %c0_3 = arith.constant 0 : index
    %c0_4 = arith.constant 0 : index
    %4 = vector.load %arg4[%c0_3, %c0_4] : memref<1x512xf32, #tpu.memory_space<vmem>>, vector<1x512xf32>
    %5 = vector.broadcast %4 : vector<1x512xf32> to vector<8x512xf32>
    %6 = arith.addf %3, %5 : vector<8x512xf32>
    %7 = arith.negf %6 : vector<8x512xf32>
    %8 = math.exp %7 : vector<8x512xf32>
    %cst_5 = arith.constant 1.000000e+00 : f32
    %9 = vector.broadcast %cst_5 : f32 to vector<8x512xf32>
    %10 = arith.addf %9, %8 : vector<8x512xf32>
    %11 = arith.divf %9, %10 : vector<8x512xf32>
    %12 = tpu.concatenate %11, %11 in 0 : vector<8x512xf32>, vector<8x512xf32> -> vector<16x512xf32>
    %c0_6 = arith.constant 0 : index
    %c0_7 = arith.constant 0 : index
    %13 = vector.load %arg1[%c0_6, %c0_7] : memref<16x512xf32, #tpu.memory_space<vmem>>, vector<16x512xf32>
    %14 = arith.mulf %12, %13 : vector<16x512xf32>
    %15 = arith.truncf %14 : vector<16x512xf32> to vector<16x512xbf16>
    %c0_8 = arith.constant 0 : index
    %c0_9 = arith.constant 0 : index
    %16 = vector.load %arg5[%c0_8, %c0_9] : memref<512x128xbf16, #tpu.memory_space<vmem>>, vector<512x128xbf16>
    %cst_10 = arith.constant dense<0.000000e+00> : vector<16x128xf32>
    %17 = tpu.matmul %15, %16, %cst_10 {dimension_numbers = #tpu.dot_dimension_numbers<[1], [0], [0], [1], [0, 0, 1, 1], [], []>} : vector<16x512xbf16>, vector<512x128xbf16>, vector<16x128xf32> -> vector<16x128xf32>
    %c0_11 = arith.constant 0 : index
    %c0_12 = arith.constant 0 : index
    %18 = vector.load %arg6[%c0_11, %c0_12] : memref<1x128xf32, #tpu.memory_space<vmem>>, vector<1x128xf32>
    %19 = vector.broadcast %18 : vector<1x128xf32> to vector<16x128xf32>
    %20 = arith.addf %17, %19 : vector<16x128xf32>
    %21 = arith.negf %20 : vector<16x128xf32>
    %22 = math.exp %21 : vector<16x128xf32>
    %cst_13 = arith.constant 1.000000e+00 : f32
    %23 = vector.broadcast %cst_13 : f32 to vector<16x128xf32>
    %24 = arith.addf %23, %22 : vector<16x128xf32>
    %25 = arith.divf %23, %24 : vector<16x128xf32>
    %26 = arith.truncf %25 : vector<16x128xf32> to vector<16x128xbf16>
    %c0_14 = arith.constant 0 : index
    %c0_15 = arith.constant 0 : index
    %27 = vector.load %arg7[%c0_14, %c0_15] : memref<128x128xbf16, #tpu.memory_space<vmem>>, vector<128x128xbf16>
    %cst_16 = arith.constant dense<0.000000e+00> : vector<16x128xf32>
    %28 = tpu.matmul %26, %27, %cst_16 {dimension_numbers = #tpu.dot_dimension_numbers<[1], [0], [0], [1], [0, 0, 1, 1], [], []>} : vector<16x128xbf16>, vector<128x128xbf16>, vector<16x128xf32> -> vector<16x128xf32>
    %c0_17 = arith.constant 0 : index
    %c0_18 = arith.constant 0 : index
    %29 = vector.load %arg8[%c0_17, %c0_18] : memref<1x128xf32, #tpu.memory_space<vmem>>, vector<1x128xf32>
    %30 = vector.broadcast %29 : vector<1x128xf32> to vector<16x128xf32>
    %31 = arith.addf %28, %30 : vector<16x128xf32>
    %c0_19 = arith.constant 0 : index
    %c0_20 = arith.constant 0 : index
    %32 = vector.load %arg16[%c0_19, %c0_20] : memref<16x128xf32, #tpu.memory_space<vmem>>, vector<16x128xf32>
    tpu.vector_store %arg16[%c0_19, %c0_20], %31 {strides = array<i32>} : memref<16x128xf32, #tpu.memory_space<vmem>>, vector<16x128xf32>,
    %33 = vector.extract_strided_slice %31 {offsets = [0, 0], sizes = [8, 32], strides = [1, 1]} : vector<16x128xf32> to vector<8x32xf32>
    %34 = vector.extract_strided_slice %31 {offsets = [8, 32], sizes = [8, 32], strides = [1, 1]} : vector<16x128xf32> to vector<8x32xf32>
    %c0_21 = arith.constant 0 : index
    %c0_22 = arith.constant 0 : index
    %35 = vector.load %arg2[%c0_21, %c0_22] : memref<8x32xf32, #tpu.memory_space<vmem>>, vector<8x32xf32>
    %cst_23 = arith.constant 5.000000e-01 : f32
    %36 = vector.broadcast %cst_23 : f32 to vector<8x32xf32>
    %37 = arith.mulf %34, %36 : vector<8x32xf32>
    %38 = math.exp %37 : vector<8x32xf32>
    %39 = arith.mulf %35, %38 : vector<8x32xf32>
    %40 = arith.addf %33, %39 : vector<8x32xf32>
    %41 = arith.truncf %40 : vector<8x32xf32> to vector<8x32xbf16>
    %c0_24 = arith.constant 0 : index
    %c0_25 = arith.constant 0 : index
    %42 = vector.load %arg9[%c0_24, %c0_25] : memref<32x128xbf16, #tpu.memory_space<vmem>>, vector<32x128xbf16>
    %cst_26 = arith.constant dense<0.000000e+00> : vector<8x128xf32>
    %43 = tpu.matmul %41, %42, %cst_26 {dimension_numbers = #tpu.dot_dimension_numbers<[1], [0], [0], [1], [0, 0, 1, 1], [], []>} : vector<8x32xbf16>, vector<32x128xbf16>, vector<8x128xf32> -> vector<8x128xf32>
    %c0_27 = arith.constant 0 : index
    %c0_28 = arith.constant 0 : index
    %44 = vector.load %arg10[%c0_27, %c0_28] : memref<1x128xf32, #tpu.memory_space<vmem>>, vector<1x128xf32>
    %45 = vector.broadcast %44 : vector<1x128xf32> to vector<8x128xf32>
    %46 = arith.addf %43, %45 : vector<8x128xf32>
    %47 = arith.negf %46 : vector<8x128xf32>
    %48 = math.exp %47 : vector<8x128xf32>
    %cst_29 = arith.constant 1.000000e+00 : f32
    %49 = vector.broadcast %cst_29 : f32 to vector<8x128xf32>
    %50 = arith.addf %49, %48 : vector<8x128xf32>
    %51 = arith.divf %49, %50 : vector<8x128xf32>
    %52 = arith.truncf %51 : vector<8x128xf32> to vector<8x128xbf16>
    %c0_30 = arith.constant 0 : index
    %c0_31 = arith.constant 0 : index
    %53 = vector.load %arg11[%c0_30, %c0_31] : memref<128x512xbf16, #tpu.memory_space<vmem>>, vector<128x512xbf16>
    %cst_32 = arith.constant dense<0.000000e+00> : vector<8x512xf32>
    %54 = tpu.matmul %52, %53, %cst_32 {dimension_numbers = #tpu.dot_dimension_numbers<[1], [0], [0], [1], [0, 0, 1, 1], [], []>} : vector<8x128xbf16>, vector<128x512xbf16>, vector<8x512xf32> -> vector<8x512xf32>
    %c0_33 = arith.constant 0 : index
    %c0_34 = arith.constant 0 : index
    %55 = vector.load %arg12[%c0_33, %c0_34] : memref<1x512xf32, #tpu.memory_space<vmem>>, vector<1x512xf32>
    %56 = vector.broadcast %55 : vector<1x512xf32> to vector<8x512xf32>
    %57 = arith.addf %54, %56 : vector<8x512xf32>
    %58 = arith.negf %57 : vector<8x512xf32>
    %59 = math.exp %58 : vector<8x512xf32>
    %cst_35 = arith.constant 1.000000e+00 : f32
    %60 = vector.broadcast %cst_35 : f32 to vector<8x512xf32>
    %61 = arith.addf %60, %59 : vector<8x512xf32>
    %62 = arith.divf %60, %61 : vector<8x512xf32>
    %63 = arith.truncf %62 : vector<8x512xf32> to vector<8x512xbf16>
    %c0_36 = arith.constant 0 : index
    %c0_37 = arith.constant 0 : index
    %64 = vector.load %arg13[%c0_36, %c0_37] : memref<512x256xbf16, #tpu.memory_space<vmem>>, vector<512x256xbf16>
    %cst_38 = arith.constant dense<0.000000e+00> : vector<8x256xf32>
    %65 = tpu.matmul %63, %64, %cst_38 {dimension_numbers = #tpu.dot_dimension_numbers<[1], [0], [0], [1], [0, 0, 1, 1], [], []>} : vector<8x512xbf16>, vector<512x256xbf16>, vector<8x256xf32> -> vector<8x256xf32>
    %c0_39 = arith.constant 0 : index
    %c0_40 = arith.constant 0 : index
    %66 = vector.load %arg14[%c0_39, %c0_40] : memref<1x256xf32, #tpu.memory_space<vmem>>, vector<1x256xf32>
    %67 = vector.broadcast %66 : vector<1x256xf32> to vector<8x256xf32>
    %68 = arith.addf %65, %67 : vector<8x256xf32>
    %c0_41 = arith.constant 0 : index
    %c0_42 = arith.constant 0 : index
    %69 = vector.load %arg15[%c0_41, %c0_42] : memref<8x256xf32, #tpu.memory_space<vmem>>, vector<8x256xf32>
    tpu.vector_store %arg15[%c0_41, %c0_42], %68 {strides = array<i32>} : memref<8x256xf32, #tpu.memory_space<vmem>>, vector<8x256xf32>,
    return
  }
}

</mosaic_0001>

<bundles_post_ra>
// kernel: tpu_custom_call.1
= control target key start
LH: loop header
LB: loop body
LE: loop exit
PB: predicated region body
PF: predicated region fallthrough
CT: control target
= control target key end

     0   :  { %s3859_s0 = inlined_call_operand.hbm [shape: f32[8,256], index: 0, kind: input, shape index: {}]   ;;  %s3860_s1 = inlined_call_operand.hbm [shape: f32[16,512], index: 1, kind: input, shape index: {}]   ;;  %s3861_s2 = inlined_call_operand.hbm [shape: f32[8,32], index: 2, kind: input, shape index: {}]   ;;  %s3862_s3 = inlined_call_operand.hbm [shape: bf16[256,512], index: 3, kind: input, shape index: {}]   ;;  %s3863_s4 = inlined_call_operand.hbm [shape: f32[1,512], index: 4, kind: input, shape index: {}]   ;;  %s3864_s5 = inlined_call_operand.hbm [shape: bf16[512,128], index: 5, kind: input, shape index: {}]   ;;  %s3865_s6 = inlined_call_operand.vmem [shape: f32[1,128], index: 6, kind: input, shape index: {}]   ;;  %s3866_s7 = inlined_call_operand.hbm [shape: bf16[128,128], index: 7, kind: input, shape index: {}]   ;;  %s3867_s8 = inlined_call_operand.hbm [shape: f32[1,128], index: 8, kind: input, shape index: {}]   ;;  %s3868_s9 = inlined_call_operand.hbm [shape: bf16[32,128], index: 9, kind: input, shape index: {}]   ;;  %s3869_s10 = inlined_call_operand.vmem [shape: f32[1,128], index: 10, kind: input, shape index: {}]   ;;  %s3870_s11 = inlined_call_operand.hbm [shape: bf16[128,512], index: 11, kind: input, shape index: {}]   ;;  %s3871_s12 = inlined_call_operand.vmem [shape: f32[1,512], index: 12, kind: input, shape index: {}]   ;;  %s3872_s13 = inlined_call_operand.hbm [shape: bf16[512,256], index: 13, kind: input, shape index: {}]   ;;  %s3873_s14 = inlined_call_operand.vmem [shape: f32[1,256], index: 14, kind: input, shape index: {}]   ;;  %s3874_s15 = inlined_call_operand.hbm [shape: f32[8,256], index: 15, kind: output, shape index: {0}]   ;;  %s3875_s16 = inlined_call_operand.hbm [shape: f32[16,128], index: 16, kind: output, shape index: {1}]  }
   0x1   :  { %3878 = sst [smem:[#allocation31_spill]] %s3859_s0 }
   0x2   :  { %22 = vsyncpa [#allocation3], 0 }
   0x3   :  { %23 = vsyncpa [#allocation6], 0 }
   0x4   :  { %24 = vsyncpa [#allocation9], 0 }
   0x5   :  { %25 = vsyncpa [#allocation12], 0 }
   0x6   :  { %26 = vsyncpa [#allocation15], 0 }
   0x7   :  { %27 = vsyncpa [#allocation18], 0 }
   0x8   :  { %28 = vsyncpa [#allocation4], 0  ;;  %s45_s23 = sshll.u32 %s3860_s1, 4  ;;  %s46_s23 = int_to_ptr.hbm [resolvable:$true] %s45_s23 }
   0x9   :  { %29 = vsyncpa [#allocation22], 0  ;;  %s3614_s24 = smov [#allocation5]   ;;  %s69_s28 = sshll.u32 %s3862_s3, 4  ;;  %s70_s28 = int_to_ptr.hbm [resolvable:$true] %s69_s28 }
   0xa   :  { %s47_s25 = sshll.u32 %s3614_s24, 4  ;;  %s3615_s29 = smov 512   ;;  %s48_s25 = int_to_ptr.vmem [resolvable:$true] %s47_s25 }
   0xb   :  { %s3616_s30 = smov 32   ;;  %s3617_s0 = smov [#allocation8]  }
   0xc   :  { %53 = dma.hbm_to_vmem [thread:$0]  %s46_s23, 1024, %s48_s25, [#allocation6], %s3615_s29, %s3615_s29, %s3616_s30  }
   0xd   :  { %s71_s17 = sshll.u32 %s3617_s0, 4  ;;  %s3618_s18 = smov 256   ;;  %s72_s17 = int_to_ptr.vmem [resolvable:$true] %s71_s17 }
   0xe   :  { %s3619_s19 = smov 16   ;;  %s93_s21 = sshll.u32 %s3864_s5, 4  ;;  %s94_s21 = int_to_ptr.hbm [resolvable:$true] %s93_s21 }
   0xf   :  { %77 = dma.hbm_to_vmem [thread:$0]  %s70_s28, 8192, %s72_s17, [#allocation9], %s3618_s18, %s3618_s18, %s3619_s19  }
  0x10   :  { %s3620_s22 = smov [#allocation11]   ;;  %s122_s27 = sshll.u32 %s3867_s8, 4  ;;  %s123_s27 = int_to_ptr.hbm [resolvable:$true] %s122_s27 }
  0x11   :  { %s95_s24 = sshll.u32 %s3620_s22, 4  ;;  %s3876_s23 = smov 64   ;;  %s96_s24 = int_to_ptr.vmem [resolvable:$true] %s95_s24 }
  0x12   :  { %s3622_s25 = smov 4   ;;  %s3623_s28 = smov [#allocation14]  }
  0x13   :  { %101 = dma.hbm_to_vmem [thread:$0]  %s94_s21, 4096, %s96_s24, [#allocation12], %s3876_s23, %s3876_s23, %s3622_s25  }
  0x14   :  { %s124_s29 = sshll.u32 %s3623_s28, 4  ;;  %s147_s5 = sshll.u32 %s3870_s11, 4  ;;  %s125_s29 = int_to_ptr.vmem [resolvable:$true] %s124_s29  ;;  %s148_s5 = int_to_ptr.hbm [resolvable:$true] %s147_s5 }
  0x15   :  { %127 = dma.hbm_to_vmem [thread:$0]  %s123_s27, 16, %s125_s29, [#allocation15]  }
  0x16   :  { %s3879_s20 = sld [smem:[#allocation31_spill]]  ;;  %s3624_s22 = smov [#allocation17]  }
  0x17   :  { %s149_s26 = sshll.u32 %s3624_s22, 4  ;;  %s3625_s21 = smov [#allocation2]   ;;  %s150_s26 = int_to_ptr.vmem [resolvable:$true] %s149_s26 }
  0x18   :  { %155 = dma.hbm_to_vmem [thread:$0]  %s148_s5, 4096, %s150_s26, [#allocation18], %s3618_s18, %s3618_s18, %s3619_s19  }
  0x19   :  { %s37_s24 = sshll.u32 %s3625_s21, 4  ;;  %s59_s23 = sshll.u32 %s3861_s2, 4  ;;  %s38_s24 = int_to_ptr.vmem [resolvable:$true] %s37_s24  ;;  %s60_s23 = int_to_ptr.hbm [resolvable:$true] %s59_s23 }
  0x1a   :  { %s83_s29 = sshll.u32 %s3863_s4, 4  ;;  %s3626_s30 = smov [#allocation7]   ;;  %s84_s29 = int_to_ptr.hbm [resolvable:$true] %s83_s29 }
  0x1b   :  { %s61_s0 = sshll.u32 %s3626_s30, 4  ;;  %s3627_s17 = smov [#allocation10]   ;;  %s62_s0 = int_to_ptr.vmem [resolvable:$true] %s61_s0 }
  0x1c   :  { %s35_s8 = sshll.u32 %s3879_s20, 4  ;;  %s85_s18 = sshll.u32 %s3627_s17, 4  ;;  %s36_s8 = int_to_ptr.hbm [resolvable:$true] %s35_s8  ;;  %s86_s18 = int_to_ptr.vmem [resolvable:$true] %s85_s18 }
  0x1d   :  { %40 = dma.hbm_to_vmem [thread:$0]  %s36_s8, 256, %s38_s24, [#allocation3]  }
  0x1e   :  { %64 = dma.hbm_to_vmem [thread:$0]  %s60_s23, 128, %s62_s0, [#allocation6]  }
  0x1f   :  { %s108_s1 = sshll.u32 %s3866_s7, 4  ;;  %s132_s8 = sshll.u32 %s3868_s9, 4  ;;  %s109_s1 = int_to_ptr.hbm [resolvable:$true] %s108_s1  ;;  %s133_s8 = int_to_ptr.hbm [resolvable:$true] %s132_s8 }
  0x20   :  { %88 = dma.hbm_to_vmem [thread:$0]  %s84_s29, 64, %s86_s18, [#allocation9]  }
  0x21   :  { %s3628_s22 = smov [#allocation13]   ;;  %s3880_s26 = smov 64  }
  0x22   :  { %s110_s4 = sshll.u32 %s3628_s22, 4  ;;  %s3629_s23 = smov [#allocation16]   ;;  %s111_s4 = int_to_ptr.vmem [resolvable:$true] %s110_s4 }
  0x23   :  { %116 = dma.hbm_to_vmem [thread:$0]  %s109_s1, 1024, %s111_s4, [#allocation12], %s3880_s26, %s3880_s26, %s3622_s25  }
  0x24   :  { %s134_s21 = sshll.u32 %s3629_s23, 4  ;;  %s162_s7 = sshll.u32 %s3872_s13, 4  ;;  %s135_s21 = int_to_ptr.vmem [resolvable:$true] %s134_s21  ;;  %s163_s7 = int_to_ptr.hbm [resolvable:$true] %s162_s7 }
  0x25   :  { %140 = dma.hbm_to_vmem [thread:$0]  %s133_s8, 256, %s135_s21, [#allocation15], %s3880_s26, %s3880_s26, %s3622_s25  }
  0x26   :  { %s3630_s9 = smov [#allocation19]   ;;  %s3631_s11 = smov 128  }
  0x27   :  { %s164_s28 = sshll.u32 %s3630_s9, 4  ;;  %s3632_s27 = smov 8   ;;  %s165_s28 = int_to_ptr.vmem [resolvable:$true] %s164_s28 }
  0x28   :  { %170 = dma.hbm_to_vmem [thread:$0]  %s163_s7, 8192, %s165_s28, [#allocation18], %s3631_s11, %s3631_s11, %s3632_s27  }
  0x29   :  { %3598 = dma.done.wait [#allocation3], 256  }
  0x2a   :  { %3599 = vsyncadd [#allocation3], 4294967040 }
  0x2b   :  { %3600 = dma.done.wait [#allocation6], 1152  }
  0x2c   :  { %3601 = vsyncadd [#allocation6], 4294966144 }
  0x2d   :  { %3602 = dma.done.wait [#allocation9], 8256  }
  0x2e   :  { %3603 = vsyncadd [#allocation9], 4294959040 }
  0x2f   :  { %3604 = dma.done.wait [#allocation12], 5120  }
  0x30   :  { %3605 = vsyncadd [#allocation12], 4294962176 }
  0x31   :  { %3606 = dma.done.wait [#allocation15], 272  }
  0x32   :  { %3607 = vsyncadd [#allocation15], 4294967024 }
  0x33   :  { %3608 = dma.done.wait [#allocation18], 12288  }
  0x34   :  { %3609 = vsyncadd [#allocation18], 4294955008  ;;  %v2307_v0 = vld [vmem:[#allocation8 + $0xe0] sm:$0xf]  ;;  %v3043_v1 = vld [vmem:[#allocation8 + $0xec] sm:$0xf0] }
  0x35   :  { %v2435_v2 = vld [vmem:[#allocation8 + $0x1e0] sm:$0xf]  ;;  %v2308_v3 = vor.u32 %v3043_v1, %v2307_v0  ;;  %v3075_v4 = vld [vmem:[#allocation8 + $0x1ec] sm:$0xf0]  ;;  %v3041_v5 = vld [vmem:[#allocation8 + $0xe4] sm:$0xf] }
  0x36   :  { %v2309_v6 = vld [vmem:[#allocation8 + $0xf0] sm:$0xf0]  ;;  %v2436_v7 = vor.u32 %v3075_v4, %v2435_v2  ;;  %v3073_v9 = vld [vmem:[#allocation8 + $0x1e4] sm:$0xf]  ;;  %v2291_v11 = vld [vmem:[#allocation8 + $0xc0] sm:$0xf] }
  0x37   :  { %v2312_v8 = vor.u32 %v3041_v5, %v2309_v6  ;;  %v2437_v10 = vld [vmem:[#allocation8 + $0x1f0] sm:$0xf0]  ;;  %616 = vmatpush.bf16.msra.mxu0 %v2308_v3  ;;  %v3039_v13 = vld [vmem:[#allocation8 + $0xcc] sm:$0xf0]  ;;  %v2419_v14 = vld [vmem:[#allocation8 + $0x1c0] sm:$0xf] }
  0x38   :  { %v2440_v12 = vor.u32 %v3073_v9, %v2437_v10  ;;  %v3071_v15 = vld [vmem:[#allocation8 + $0x1cc] sm:$0xf0]  ;;  %629 = vmatpush.bf16.msra.mxu1 %v2436_v7  ;;  %v2292_v16 = vor.u32 %v3039_v13, %v2291_v11  ;;  %v3037_v18 = vld [vmem:[#allocation8 + $0xc4] sm:$0xf]  ;;  %v2293_v19 = vld [vmem:[#allocation8 + $0xd0] sm:$0xf0] }
  0x39   :  { %642 = vmatpush.bf16.msra.mxu2 %v2312_v8  ;;  %v2420_v17 = vor.u32 %v3071_v15, %v2419_v14  ;;  %v3069_v20 = vld [vmem:[#allocation8 + $0x1c4] sm:$0xf]  ;;  %v2296_v21 = vor.u32 %v3037_v18, %v2293_v19  ;;  %v2421_v22 = vld [vmem:[#allocation8 + $0x1d0] sm:$0xf0]  ;;  %v2275_v23 = vld [vmem:[#allocation8 + $0xa0] sm:$0xf] }
  0x3a   :  { %655 = vmatpush.bf16.msra.mxu3 %v2440_v12  ;;  %v3035_v24 = vld [vmem:[#allocation8 + $0xac] sm:$0xf0]  ;;  %v2424_v25 = vor.u32 %v3069_v20, %v2421_v22  ;;  %v2403_v26 = vld [vmem:[#allocation8 + $0x1a0] sm:$0xf]  ;;  %v3033_v28 = vld [vmem:[#allocation8 + $0xa4] sm:$0xf] }
  0x3b   :  { %v3067_v27 = vld [vmem:[#allocation8 + $0x1ac] sm:$0xf0]  ;;  %617 = vmatpush.bf16.msra.mxu0 %v2292_v16  ;;  %v2276_v29 = vor.u32 %v3035_v24, %v2275_v23  ;;  %v2277_v30 = vld [vmem:[#allocation8 + $0xb0] sm:$0xf0]  ;;  %v3065_v31 = vld [vmem:[#allocation8 + $0x1a4] sm:$0xf] }
  0x3c   :  { %v2405_v32 = vld [vmem:[#allocation8 + $0x1b0] sm:$0xf0]  ;;  %630 = vmatpush.bf16.msra.mxu1 %v2420_v17  ;;  %v2404_v33 = vor.u32 %v3067_v27, %v2403_v26  ;;  %v2280_v34 = vor.u32 %v3033_v28, %v2277_v30  ;;  %v2259_v35 = vld [vmem:[#allocation8 + $0x80] sm:$0xf]  ;;  %v3031_v36 = vld [vmem:[#allocation8 + $0x8c] sm:$0xf0] }
  0x3d   :  { %643 = vmatpush.bf16.msra.mxu2 %v2296_v21  ;;  %v2387_v37 = vld [vmem:[#allocation8 + $0x180] sm:$0xf]  ;;  %v2408_v38 = vor.u32 %v3065_v31, %v2405_v32  ;;  %v3063_v39 = vld [vmem:[#allocation8 + $0x18c] sm:$0xf0]  ;;  %v3029_v40 = vld [vmem:[#allocation8 + $0x84] sm:$0xf]  ;;  %v2260_v44 = vor.u32 %v3031_v36, %v2259_v35 }
  0x3e   :  { %656 = vmatpush.bf16.msra.mxu3 %v2424_v25  ;;  %v2261_v41 = vld [vmem:[#allocation8 + $0x90] sm:$0xf0]  ;;  %v3061_v42 = vld [vmem:[#allocation8 + $0x184] sm:$0xf]  ;;  %v2388_v45 = vor.u32 %v3063_v39, %v2387_v37  ;;  %v2243_v47 = vld [vmem:[#allocation8 + $0x60] sm:$0xf] }
  0x3f   :  { %v2389_v43 = vld [vmem:[#allocation8 + $0x190] sm:$0xf0]  ;;  %618 = vmatpush.bf16.msra.mxu0 %v2276_v29  ;;  %v2264_v46 = vor.u32 %v3029_v40, %v2261_v41  ;;  %v3027_v48 = vld [vmem:[#allocation8 + $0x6c] sm:$0xf0]  ;;  %v2371_v49 = vld [vmem:[#allocation8 + $0x160] sm:$0xf] }
  0x40   :  { %631 = vmatpush.bf16.msra.mxu1 %v2404_v33  ;;  %v2392_v50 = vor.u32 %v3061_v42, %v2389_v43  ;;  %v3059_v51 = vld [vmem:[#allocation8 + $0x16c] sm:$0xf0]  ;;  %v3025_v52 = vld [vmem:[#allocation8 + $0x64] sm:$0xf]  ;;  %v2245_v53 = vld [vmem:[#allocation8 + $0x70] sm:$0xf0]  ;;  %v2244_v56 = vor.u32 %v3027_v48, %v2243_v47 }
  0x41   :  { %644 = vmatpush.bf16.msra.mxu2 %v2280_v34  ;;  %v3057_v54 = vld [vmem:[#allocation8 + $0x164] sm:$0xf]  ;;  %v2373_v55 = vld [vmem:[#allocation8 + $0x170] sm:$0xf0]  ;;  %v2372_v57 = vor.u32 %v3059_v51, %v2371_v49  ;;  %v2248_v58 = vor.u32 %v3025_v52, %v2245_v53  ;;  %v2227_v59 = vld [vmem:[#allocation8 + $0x40] sm:$0xf] }
  0x42   :  { %657 = vmatpush.bf16.msra.mxu3 %v2408_v38  ;;  %v3023_v60 = vld [vmem:[#allocation8 + $0x4c] sm:$0xf0]  ;;  %v2355_v61 = vld [vmem:[#allocation8 + $0x140] sm:$0xf]  ;;  %v2376_v62 = vor.u32 %v3057_v54, %v2373_v55  ;;  %v3021_v0 = vld [vmem:[#allocation8 + $0x44] sm:$0xf] }
  0x43   :  { %619 = vmatpush.bf16.msra.mxu0 %v2260_v44  ;;  %v3055_v63 = vld [vmem:[#allocation8 + $0x14c] sm:$0xf0]  ;;  %v2229_v1 = vld [vmem:[#allocation8 + $0x50] sm:$0xf0]  ;;  %v3053_v2 = vld [vmem:[#allocation8 + $0x144] sm:$0xf]  ;;  %v2228_v4 = vor.u32 %v3023_v60, %v2227_v59 }
  0x44   :  { %632 = vmatpush.bf16.msra.mxu1 %v2388_v45  ;;  %v2357_v3 = vld [vmem:[#allocation8 + $0x150] sm:$0xf0]  ;;  %v2356_v5 = vor.u32 %v3055_v63, %v2355_v61  ;;  %v2232_v6 = vor.u32 %v3021_v0, %v2229_v1  ;;  %v2211_v7 = vld [vmem:[#allocation8 + $0x20] sm:$0xf]  ;;  %v3019_v8 = vld [vmem:[#allocation8 + $0x2c] sm:$0xf0] }
  0x45   :  { %645 = vmatpush.bf16.msra.mxu2 %v2264_v46  ;;  %v2339_v9 = vld [vmem:[#allocation8 + $0x120] sm:$0xf]  ;;  %v2360_v10 = vor.u32 %v3053_v2, %v2357_v3  ;;  %v3051_v11 = vld [vmem:[#allocation8 + $0x12c] sm:$0xf0]  ;;  %v3017_v12 = vld [vmem:[#allocation8 + $0x24] sm:$0xf]  ;;  %v2212_v16 = vor.u32 %v3019_v8, %v2211_v7 }
  0x46   :  { %658 = vmatpush.bf16.msra.mxu3 %v2392_v50  ;;  %v2213_v13 = vld [vmem:[#allocation8 + $0x30] sm:$0xf0]  ;;  %v3049_v14 = vld [vmem:[#allocation8 + $0x124] sm:$0xf]  ;;  %v2195_v17 = vld [vmem:[#allocation8] sm:$0xf]  ;;  %v2340_v19 = vor.u32 %v3051_v11, %v2339_v9 }
  0x47   :  { %620 = vmatpush.bf16.msra.mxu0 %v2244_v56  ;;  %v2341_v15 = vld [vmem:[#allocation8 + $0x130] sm:$0xf0]  ;;  %v3015_v18 = vld [vmem:[#allocation8 + $0xc] sm:$0xf0]  ;;  %v2216_v20 = vor.u32 %v3017_v12, %v2213_v13  ;;  %v2323_v21 = vld [vmem:[#allocation8 + $0x100] sm:$0xf] }
  0x48   :  { %633 = vmatpush.bf16.msra.mxu1 %v2372_v57  ;;  %v3047_v22 = vld [vmem:[#allocation8 + $0x10c] sm:$0xf0]  ;;  %v3013_v23 = vld [vmem:[#allocation8 + $0x4] sm:$0xf]  ;;  %v2344_v24 = vor.u32 %v3049_v14, %v2341_v15  ;;  %v2197_v25 = vld [vmem:[#allocation8 + $0x10] sm:$0xf0]  ;;  %v2196_v31 = vor.u32 %v3015_v18, %v2195_v17 }
  0x49   :  { %646 = vmatpush.bf16.msra.mxu2 %v2248_v58  ;;  %v3045_v26 = vld [vmem:[#allocation8 + $0x104] sm:$0xf]  ;;  %v2325_v27 = vld [vmem:[#allocation8 + $0x110] sm:$0xf0]  ;;  %v2315_v28 = vld [vmem:[#allocation8 + $0xe8] sm:$0xf]  ;;  %v2324_v35 = vor.u32 %v3047_v22, %v2323_v21  ;;  %v2200_v36 = vor.u32 %v3013_v23, %v2197_v25 }
  0x4a   :  { %659 = vmatpush.bf16.msra.mxu3 %v2376_v62  ;;  %v3044_v29 = vld [vmem:[#allocation8 + $0xf4] sm:$0xf0]  ;;  %v2443_v30 = vld [vmem:[#allocation8 + $0x1e8] sm:$0xf]  ;;  %v3042_v33 = vld [vmem:[#allocation8 + $0xec] sm:$0xf]  ;;  %v2328_v40 = vor.u32 %v3045_v26, %v2325_v27 }
  0x4b   :  { %621 = vmatpush.bf16.msra.mxu0 %v2228_v4  ;;  %v3076_v32 = vld [vmem:[#allocation8 + $0x1f4] sm:$0xf0]  ;;  %v2317_v34 = vld [vmem:[#allocation8 + $0xf8] sm:$0xf0]  ;;  %v3074_v37 = vld [vmem:[#allocation8 + $0x1ec] sm:$0xf]  ;;  %v2316_v41 = vor.u32 %v3044_v29, %v2315_v28 }
  0x4c   :  { %634 = vmatpush.bf16.msra.mxu1 %v2356_v5  ;;  %v2445_v38 = vld [vmem:[#allocation8 + $0x1f8] sm:$0xf0]  ;;  %v218_v39 = vld [vmem:[#allocation2] sm:$0xff]  ;;  %v219_v42 = vld [vmem:[#allocation2 + $0x8] sm:$0xff]  ;;  %v2444_v43 = vor.u32 %v3076_v32, %v2443_v30  ;;  %v2320_v44 = vor.u32 %v3042_v33, %v2317_v34  ;;  %s2170_s5 = sshll.u32 %s3875_s16, 4  ;;  %s2160_s22 = sshll.u32 %s3874_s15, 4  ;;  %s2171_s5 = int_to_ptr.hbm [resolvable:$true] %s2170_s5  ;;  %s2161_s22 = int_to_ptr.hbm [resolvable:$true] %s2160_s22 }
  0x4d   :  { %647 = vmatpush.bf16.msra.mxu2 %v2232_v6  ;;  %v2299_v45 = vld [vmem:[#allocation8 + $0xc8] sm:$0xf]  ;;  %v3040_v46 = vld [vmem:[#allocation8 + $0xd4] sm:$0xf0]  ;;  %v2448_v48 = vor.u32 %v3074_v37, %v2445_v38  ;;  %v3766_v49 = vpack.c.bf16 %v218_v39, %v218_v39  ;;  %v3038_v51 = vld [vmem:[#allocation8 + $0xcc] sm:$0xf]  ;;  %v3768_v53 = vpack.c.bf16 %v219_v42, %v219_v42 }
  0x4e   :  { %660 = vmatpush.bf16.msra.mxu3 %v2360_v10  ;;  %v2427_v47 = vld [vmem:[#allocation8 + $0x1c8] sm:$0xf]  ;;  %v3072_v50 = vld [vmem:[#allocation8 + $0x1d4] sm:$0xf0]  ;;  %v2301_v52 = vld [vmem:[#allocation8 + $0xd8] sm:$0xf0]  ;;  %v2300_v56 = vor.u32 %v3040_v46, %v2299_v45 }
  0x4f   :  { %622 = vmatpush.bf16.msra.mxu0 %v2212_v16  ;;  %v3070_v54 = vld [vmem:[#allocation8 + $0x1cc] sm:$0xf]  ;;  %v2429_v55 = vld [vmem:[#allocation8 + $0x1d8] sm:$0xf0]  ;;  %v2428_v57 = vor.u32 %v3072_v50, %v2427_v47  ;;  %v2304_v58 = vor.u32 %v3038_v51, %v2301_v52  ;;  %v2283_v59 = vld [vmem:[#allocation8 + $0xa8] sm:$0xf] }
  0x50   :  { %635 = vmatpush.bf16.msra.mxu1 %v2340_v19  ;;  %v3036_v60 = vld [vmem:[#allocation8 + $0xb4] sm:$0xf0]  ;;  %v2411_v61 = vld [vmem:[#allocation8 + $0x1a8] sm:$0xf]  ;;  %v2432_v62 = vor.u32 %v3070_v54, %v2429_v55  ;;  %v3034_v0 = vld [vmem:[#allocation8 + $0xac] sm:$0xf] }
  0x51   :  { %648 = vmatpush.bf16.msra.mxu2 %v2216_v20  ;;  %v3068_v63 = vld [vmem:[#allocation8 + $0x1b4] sm:$0xf0]  ;;  %v2285_v1 = vld [vmem:[#allocation8 + $0xb8] sm:$0xf0]  ;;  %v3066_v2 = vld [vmem:[#allocation8 + $0x1ac] sm:$0xf]  ;;  %v2284_v4 = vor.u32 %v3036_v60, %v2283_v59 }
  0x52   :  { %661 = vmatpush.bf16.msra.mxu3 %v2344_v24  ;;  %v2413_v3 = vld [vmem:[#allocation8 + $0x1b8] sm:$0xf0]  ;;  %v2412_v5 = vor.u32 %v3068_v63, %v2411_v61  ;;  %v2288_v6 = vor.u32 %v3034_v0, %v2285_v1  ;;  %v2267_v7 = vld [vmem:[#allocation8 + $0x88] sm:$0xf]  ;;  %v3032_v8 = vld [vmem:[#allocation8 + $0x94] sm:$0xf0] }
  0x53   :  { %623 = vmatpush.bf16.msra.mxu0 %v2196_v31  ;;  %v2395_v9 = vld [vmem:[#allocation8 + $0x188] sm:$0xf]  ;;  %v2416_v10 = vor.u32 %v3066_v2, %v2413_v3  ;;  %v3064_v11 = vld [vmem:[#allocation8 + $0x194] sm:$0xf0]  ;;  %v3030_v12 = vld [vmem:[#allocation8 + $0x8c] sm:$0xf]  ;;  %v2268_v16 = vor.u32 %v3032_v8, %v2267_v7 }
  0x54   :  { %636 = vmatpush.bf16.msra.mxu1 %v2324_v35  ;;  %v2269_v13 = vld [vmem:[#allocation8 + $0x98] sm:$0xf0]  ;;  %v3062_v14 = vld [vmem:[#allocation8 + $0x18c] sm:$0xf]  ;;  %v2251_v17 = vld [vmem:[#allocation8 + $0x68] sm:$0xf]  ;;  %v2396_v19 = vor.u32 %v3064_v11, %v2395_v9 }
  0x55   :  { %649 = vmatpush.bf16.msra.mxu2 %v2200_v36  ;;  %v2397_v15 = vld [vmem:[#allocation8 + $0x198] sm:$0xf0]  ;;  %v3028_v18 = vld [vmem:[#allocation8 + $0x74] sm:$0xf0]  ;;  %v2272_v20 = vor.u32 %v3030_v12, %v2269_v13  ;;  %v2379_v21 = vld [vmem:[#allocation8 + $0x168] sm:$0xf] }
  0x56   :  { %662 = vmatpush.bf16.msra.mxu3 %v2328_v40  ;;  %624 = vmatmul.bf16.vlgmr.msra.gmra.mxu0 %v3766_v49  ;;  %v3060_v22 = vld [vmem:[#allocation8 + $0x174] sm:$0xf0]  ;;  %v3026_v23 = vld [vmem:[#allocation8 + $0x6c] sm:$0xf]  ;;  %v2400_v24 = vor.u32 %v3062_v14, %v2397_v15  ;;  %v2253_v25 = vld [vmem:[#allocation8 + $0x78] sm:$0xf0]  ;;  %v2252_v28 = vor.u32 %v3028_v18, %v2251_v17 }
  0x57   :  { %668 = vmatpush.bf16.msrb.mxu0 %v2316_v41  ;;  %637 = vmatmul.bf16.vlgmr.msra.gmra.mxu1 %v3768_v53  ;;  %v3058_v26 = vld [vmem:[#allocation8 + $0x16c] sm:$0xf]  ;;  %v2381_v27 = vld [vmem:[#allocation8 + $0x178] sm:$0xf0]  ;;  %v2380_v29 = vor.u32 %v3060_v22, %v2379_v21  ;;  %v2256_v30 = vor.u32 %v3026_v23, %v2253_v25  ;;  %v2235_v31 = vld [vmem:[#allocation8 + $0x48] sm:$0xf] }
  0x58   :  { %681 = vmatpush.bf16.msrb.mxu1 %v2444_v43  ;;  %650 = vmatmul.bf16.vlgmr.msra.gmra.mxu2 %v3766_v49  ;;  %v3024_v32 = vld [vmem:[#allocation8 + $0x54] sm:$0xf0]  ;;  %v2363_v33 = vld [vmem:[#allocation8 + $0x148] sm:$0xf]  ;;  %v2384_v34 = vor.u32 %v3058_v26, %v2381_v27  ;;  %v3022_v36 = vld [vmem:[#allocation8 + $0x4c] sm:$0xf] }
  0x59   :  { %694 = vmatpush.bf16.msrb.mxu2 %v2320_v44  ;;  %663 = vmatmul.bf16.vlgmr.msra.gmra.mxu3 %v3768_v53  ;;  %v3056_v35 = vld [vmem:[#allocation8 + $0x154] sm:$0xf0]  ;;  %v2237_v37 = vld [vmem:[#allocation8 + $0x58] sm:$0xf0]  ;;  %v3054_v38 = vld [vmem:[#allocation8 + $0x14c] sm:$0xf]  ;;  %v2236_v40 = vor.u32 %v3024_v32, %v2235_v31 }
  0x5a   :  { %707 = vmatpush.bf16.msrb.mxu3 %v2448_v48  ;;  %v2365_v39 = vld [vmem:[#allocation8 + $0x158] sm:$0xf0]  ;;  %v2364_v41 = vor.u32 %v3056_v35, %v2363_v33  ;;  %v2240_v42 = vor.u32 %v3022_v36, %v2237_v37  ;;  %v2219_v43 = vld [vmem:[#allocation8 + $0x28] sm:$0xf]  ;;  %v3020_v44 = vld [vmem:[#allocation8 + $0x34] sm:$0xf0] }
  0x5b   :  { %669 = vmatpush.bf16.msrb.mxu0 %v2300_v56  ;;  %v2347_v45 = vld [vmem:[#allocation8 + $0x128] sm:$0xf]  ;;  %v2368_v46 = vor.u32 %v3054_v38, %v2365_v39  ;;  %v3052_v47 = vld [vmem:[#allocation8 + $0x134] sm:$0xf0]  ;;  %v3018_v48 = vld [vmem:[#allocation8 + $0x2c] sm:$0xf]  ;;  %v2220_v54 = vor.u32 %v3020_v44, %v2219_v43 }
  0x5c   :  { %682 = vmatpush.bf16.msrb.mxu1 %v2428_v57  ;;  %v2221_v50 = vld [vmem:[#allocation8 + $0x38] sm:$0xf0]  ;;  %v3050_v51 = vld [vmem:[#allocation8 + $0x12c] sm:$0xf]  ;;  %v2348_v55 = vor.u32 %v3052_v47, %v2347_v45  ;;  %v2203_v57 = vld [vmem:[#allocation8 + $0x8] sm:$0xf] }
  0x5d   :  { %695 = vmatpush.bf16.msrb.mxu2 %v2304_v58  ;;  %v2349_v52 = vld [vmem:[#allocation8 + $0x138] sm:$0xf0]  ;;  %v2224_v56 = vor.u32 %v3018_v48, %v2221_v50  ;;  %v3016_v58 = vld [vmem:[#allocation8 + $0x14] sm:$0xf0]  ;;  %v2331_v59 = vld [vmem:[#allocation8 + $0x108] sm:$0xf] }
  0x5e   :  { %708 = vmatpush.bf16.msrb.mxu3 %v2432_v62  ;;  %v2352_v60 = vor.u32 %v3050_v51, %v2349_v52  ;;  %v3048_v61 = vld [vmem:[#allocation8 + $0x114] sm:$0xf0]  ;;  %v3014_v62 = vld [vmem:[#allocation8 + $0xc] sm:$0xf]  ;;  %v2205_v63 = vld [vmem:[#allocation8 + $0x18] sm:$0xf0]  ;;  %v2204_v2 = vor.u32 %v3016_v58, %v2203_v57 }
  0x5f   :  { %670 = vmatpush.bf16.msrb.mxu0 %v2284_v4  ;;  %v3046_v0 = vld [vmem:[#allocation8 + $0x10c] sm:$0xf]  ;;  %v2333_v1 = vld [vmem:[#allocation8 + $0x118] sm:$0xf0]  ;;  %v2332_v3 = vor.u32 %v3048_v61, %v2331_v59  ;;  %v2208_v4 = vor.u32 %v3014_v62, %v2205_v63  ;;  %v3083_v7 = vld [vmem:[#allocation11 + $0x30] sm:$0xff] }
  0x60   :  { %683 = vmatpush.bf16.msrb.mxu1 %v2412_v5  ;;  %v2336_v5 = vor.u32 %v3046_v0, %v2333_v1  ;;  %v3092_v8 = vld [vmem:[#allocation11 + $0x78] sm:$0xff]  ;;  %v3082_v9 = vld [vmem:[#allocation11 + $0x28] sm:$0xff]  ;;  %v3081_v11 = vld [vmem:[#allocation11 + $0x20] sm:$0xff] }
  0x61   :  { %696 = vmatpush.bf16.msrb.mxu2 %v2288_v6  ;;  %v3084_v6 = vld [vmem:[#allocation11 + $0x38] sm:$0xff]  ;;  %v3090_v12 = vld [vmem:[#allocation11 + $0x68] sm:$0xff]  ;;  %v3089_v14 = vld [vmem:[#allocation11 + $0x60] sm:$0xff] }
  0x62   :  { %709 = vmatpush.bf16.msrb.mxu3 %v2416_v10  ;;  %v3091_v10 = vld [vmem:[#allocation11 + $0x70] sm:$0xff]  ;;  %v3080_v13 = vld [vmem:[#allocation11 + $0x18] sm:$0xff]  ;;  %v3078_v17 = vld [vmem:[#allocation11 + $0x8] sm:$0xff] }
  0x63   :  { %671 = vmatpush.bf16.msrb.mxu0 %v2268_v16  ;;  %v3088_v15 = vld [vmem:[#allocation11 + $0x58] sm:$0xff]  ;;  %v3077_v22 = vld [vmem:[#allocation11] sm:$0xff]  ;;  %v3086_v26 = vld [vmem:[#allocation11 + $0x48] sm:$0xff] }
  0x64   :  { %684 = vmatpush.bf16.msrb.mxu1 %v2396_v19  ;;  %v3087_v19 = vld [vmem:[#allocation11 + $0x50] sm:$0xff]  ;;  %v3085_v33 = vld [vmem:[#allocation11 + $0x40] sm:$0xff]  ;;  %v3108_v35 = vld [vmem:[#allocation11 + $0xf8] sm:$0xff] }
  0x65   :  { %697 = vmatpush.bf16.msrb.mxu2 %v2272_v20  ;;  %v3098_v37 = vld [vmem:[#allocation11 + $0xa8] sm:$0xff]  ;;  %v3097_v43 = vld [vmem:[#allocation11 + $0xa0] sm:$0xff]  ;;  %v3104_v58 = vld [vmem:[#allocation11 + $0xd8] sm:$0xff] }
  0x66   :  { %710 = vmatpush.bf16.msrb.mxu3 %v2400_v24  ;;  %v3100_v24 = vld [vmem:[#allocation11 + $0xb8] sm:$0xff]  ;;  %v3106_v45 = vld [vmem:[#allocation11 + $0xe8] sm:$0xff]  ;;  %v3105_v50 = vld [vmem:[#allocation11 + $0xe0] sm:$0xff] }
  0x67   :  { %672 = vmatpush.bf16.msrb.mxu0 %v2252_v28  ;;  %v3094_v61 = vld [vmem:[#allocation11 + $0x88] sm:$0xff] }
  0x68   :  { %685 = vmatpush.bf16.msrb.mxu1 %v2380_v29  ;;  %v3099_v29 = vld [vmem:[#allocation11 + $0xb0] sm:$0xff] }
  0x69   :  { %698 = vmatpush.bf16.msrb.mxu2 %v2256_v30 }
  0x6a   :  { %711 = vmatpush.bf16.msrb.mxu3 %v2384_v34 }
  0x6b   :  { %673 = vmatpush.bf16.msrb.mxu0 %v2236_v40  ;;  %v3107_v40 = vld [vmem:[#allocation11 + $0xf0] sm:$0xff] }
  0x6c   :  { %686 = vmatpush.bf16.msrb.mxu1 %v2364_v41 }
  0x6d   :  { %699 = vmatpush.bf16.msrb.mxu2 %v2240_v42 }
  0x6e   :  { %712 = vmatpush.bf16.msrb.mxu3 %v2368_v46  ;;  %v3096_v46 = vld [vmem:[#allocation11 + $0x98] sm:$0xff] }
  0x6f   :  { %674 = vmatpush.bf16.msrb.mxu0 %v2220_v54  ;;  %v3095_v54 = vld [vmem:[#allocation11 + $0x90] sm:$0xff] }
  0x70   :  { %687 = vmatpush.bf16.msrb.mxu1 %v2348_v55 }
  0x71   :  { %700 = vmatpush.bf16.msrb.mxu2 %v2224_v56 }
  0x72   :  { %713 = vmatpush.bf16.msrb.mxu3 %v2352_v60 }
  0x73   :  { %675 = vmatpush.bf16.msrb.mxu0 %v2204_v2 }
  0x74   :  { %688 = vmatpush.bf16.msrb.mxu1 %v2332_v3 }
  0x75   :  { %701 = vmatpush.bf16.msrb.mxu2 %v2208_v4  ;;  %v3103_v4 = vld [vmem:[#allocation11 + $0xd0] sm:$0xff] }
  0x76   :  { %714 = vmatpush.bf16.msrb.mxu3 %v2336_v5  ;;  %676 = vmatmul.bf16.vlgmr.msrb.gmra.mxu0 %v3766_v49 }
  0x77   :  { %689 = vmatmul.bf16.vlgmr.msrb.gmra.mxu1 %v3768_v53  ;;  %1076 = vmatpush.bf16.msra.mxu0 %v3084_v6 }
  0x78   :  { %702 = vmatmul.bf16.vlgmr.msrb.gmra.mxu2 %v3766_v49  ;;  %1090 = vmatpush.bf16.msra.mxu1 %v3092_v8  ;;  %v3778_v49 = vld [vmem:[#allocation10] sm:$0xf]  ;;  %v796_v8 = vld [vmem:[#allocation5] sm:$0xff] }
  0x79   :  { %715 = vmatmul.bf16.vlgmr.msrb.gmra.mxu3 %v3768_v53  ;;  %v3079_v53 = vld [vmem:[#allocation11 + $0x10] sm:$0xff]  ;;  %v288_v16 = vperm.slane %v3778_v49, 0  ;;  %v289_v25 = vperm.slane %v3778_v49, 1  ;;  %1104 = vmatpush.bf16.msra.mxu2 %v3100_v24  ;;  %v290_v59 = vperm.slane %v3778_v49, 2 }
  0x7a   :  { %1118 = vmatpush.bf16.msra.mxu3 %v3108_v35 }
  0x7b   :  { %1077 = vmatpush.bf16.msra.mxu0 %v3083_v7 }
  0x7c   :  { %1091 = vmatpush.bf16.msra.mxu1 %v3091_v10 }
  0x7d   :  { %1105 = vmatpush.bf16.msra.mxu2 %v3099_v29 }
  0x7e   :  { %1119 = vmatpush.bf16.msra.mxu3 %v3107_v40 }
  0x7f   :  { %1078 = vmatpush.bf16.msra.mxu0 %v3082_v9  ;;  %v800_v9 = vld [vmem:[#allocation5 + $0x20] sm:$0xff] }
  0x80   :  { %1092 = vmatpush.bf16.msra.mxu1 %v3090_v12 }
  0x81   :  { %1106 = vmatpush.bf16.msra.mxu2 %v3098_v37 }
  0x82   :  { %1120 = vmatpush.bf16.msra.mxu3 %v3106_v45 }
  0x83   :  { %1079 = vmatpush.bf16.msra.mxu0 %v3081_v11 }
  0x84   :  { %1093 = vmatpush.bf16.msra.mxu1 %v3089_v14  ;;  %v3102_v14 = vld [vmem:[#allocation11 + $0xc8] sm:$0xff] }
  0x85   :  { %1107 = vmatpush.bf16.msra.mxu2 %v3097_v43 }
  0x86   :  { %1121 = vmatpush.bf16.msra.mxu3 %v3105_v50 }
  0x87   :  { %1080 = vmatpush.bf16.msra.mxu0 %v3080_v13  ;;  %v3093_v13 = vld [vmem:[#allocation11 + $0x80] sm:$0xff] }
  0x88   :  { %1094 = vmatpush.bf16.msra.mxu1 %v3088_v15 }
  0x89   :  { %1108 = vmatpush.bf16.msra.mxu2 %v3096_v46 }
  0x8a   :  { %1122 = vmatpush.bf16.msra.mxu3 %v3104_v58  ;;  %v798_v58 = vld [vmem:[#allocation5 + $0x10] sm:$0xff] }
  0x8b   :  { %1081 = vmatpush.bf16.msra.mxu0 %v3079_v53 }
  0x8c   :  { %1095 = vmatpush.bf16.msra.mxu1 %v3087_v19 }
  0x8d   :  { %1109 = vmatpush.bf16.msra.mxu2 %v3095_v54 }
  0x8e   :  { %1123 = vmatpush.bf16.msra.mxu3 %v3103_v4 }
  0x8f   :  { %1082 = vmatpush.bf16.msra.mxu0 %v3078_v17  ;;  %v291_v17 = vperm.slane %v3778_v49, 3 }
  0x90   :  { %1096 = vmatpush.bf16.msra.mxu1 %v3086_v26 }
  0x91   :  { %1110 = vmatpush.bf16.msra.mxu2 %v3094_v61 }
  0x92   :  { %1124 = vmatpush.bf16.msra.mxu3 %v3102_v14  ;;  %v3116_v14 = vld [vmem:[#allocation13 + $0x38] sm:$0xff] }
  0x93   :  { %1083 = vmatpush.bf16.msra.mxu0 %v3077_v22 }
  0x94   :  { %1097 = vmatpush.bf16.msra.mxu1 %v3085_v33 }
  0x95   :  { %1111 = vmatpush.bf16.msra.mxu2 %v3093_v13 }
  0x97   :  { %1239 = vmatpush.bf16.msrb.mxu0 %v3116_v14 }
  0xd3   :  { %v625_v18 = vpop.f32.mrf.mxu0 }
  0xd4   :  { %v626_v20 = vadd.f32 %v625_v18, %v288_v16  ;;  %v638_v21 = vpop.f32.mrf.mxu1 }
  0xd6   :  { %v639_v23 = vadd.f32 %v638_v21, %v626_v20 }
  0xd8   :  { %v2449_v27 = vmul.f32 -1.442695, %v639_v23 }
  0xda   :  { %3240 = vpow2.f32 %v2449_v27 }
  0xdb   :  { %v651_v28 = vpop.f32.mrf.mxu2  ;;  %v627_v32 = vpop.f32.mrf.mxu0 }
  0xdc   :  { %v652_v30 = vadd.f32 %v651_v28, %v289_v25  ;;  %v664_v31 = vpop.f32.mrf.mxu3  ;;  %v640_v34 = vpop.f32.mrf.mxu1  ;;  %v3101_v25 = vld [vmem:[#allocation11 + $0xc0] sm:$0xff] }
  0xdd   :  { %1125 = vmatpush.bf16.msra.mxu3 %v3101_v25 }
  0xde   :  { %v665_v36 = vadd.f32 %v664_v31, %v652_v30  ;;  %v797_v30 = vld [vmem:[#allocation5 + $0x8] sm:$0xff] }
  0xdf   :  { %v801_v31 = vld [vmem:[#allocation5 + $0x28] sm:$0xff] }
  0xe0   :  { %v2450_v38 = vmul.f32 -1.442695, %v665_v36  ;;  %v3241_v39 = vpop.eup %3240 }
  0xe1   :  { %v732_v41 = vadd.f32 1.0, %v3241_v39 }
  0xe2   :  { %3242 = vpow2.f32 %v2450_v38 }
  0xe3   :  { %v653_v42 = vpop.f32.mrf.mxu2  ;;  %3244 = vrcp.f32 %v732_v41  ;;  %v747_v55 = vand.u32 2147483648, %v732_v41  ;;  %vm741_vm0 = vweird.f32 %v732_v41  ;;  %v745_v57 = vand.u32 2147483647, %v732_v41 }
  0xe4   :  { %v666_v44 = vpop.f32.mrf.mxu3 }
  0xe5   :  { %v748_v63 = vor.u32 1.1754944e-38, %v747_v55  ;;  %vm3787_vm3 = vcmp.eq.f32.partialorder %v745_v57, 8.507059e+37 }
  0xe8   :  { %v3243_v47 = vpop.eup %3242 }
  0xe9   :  { %v733_v48 = vadd.f32 1.0, %v3243_v47  ;;  %v3245_v51 = vpop.eup %3244 }
  0xea   :  { %v737_v52 = vmul.f32 %v3245_v51, %v732_v41  ;;  %vm742_vm1 = vweird.f32 %v3245_v51 }
  0xeb   :  { %3246 = vrcp.f32 %v733_v48  ;;  %vm3783_vm2 = vmor %vm741_vm0, %vm742_vm1  ;;  %vm756_vm4 = vweird.f32 %v733_v48  ;;  %v760_v11 = vand.u32 2147483647, %v733_v48  ;;  %v762_v12 = vand.u32 2147483648, %v733_v48 }
  0xec   :  { %v738_v56 = vsub.f32 1.0, %v737_v52 }
  0xed   :  { %v763_v24 = vor.u32 1.1754944e-38, %v762_v12  ;;  %vm761_vm7 = vcmp.eq.f32.partialorder %v760_v11, 8.507059e+37 }
  0xee   :  { %v739_v60 = vmul.f32 %v3245_v51, %v738_v56 }
  0xf0   :  { %v740_v2 = vadd.f32 %v3245_v51, %v739_v60 }
  0xf1   :  { %v3247_v0 = vpop.eup %3246 }
  0xf2   :  { %v752_v5 = vmul.f32 %v3247_v0, %v733_v48  ;;  %v744_v10 = vsel %vm3783_vm2, %v3245_v51, %v740_v2  ;;  %vm757_vm5 = vweird.f32 %v3247_v0 }
  0xf3   :  { %v677_v1 = vpop.f32.mrf.mxu0  ;;  %v749_v16 = vsel %vm3787_vm3, %v748_v63, %v744_v10  ;;  %vm3797_vm6 = vmor %vm756_vm4, %vm757_vm5 }
  0xf4   :  { %v678_v6 = vadd.f32 %v677_v1, %v290_v59  ;;  %v690_v7 = vpop.f32.mrf.mxu1  ;;  %v753_v53 = vsub.f32 1.0, %v752_v5  ;;  %v804_v18 = vmul.f32 %v796_v8, %v749_v16  ;;  %v808_v19 = vmul.f32 %v800_v9, %v749_v16  ;;  %v802_v59 = vld [vmem:[#allocation5 + $0x30] sm:$0xff]  ;;  %v803_v8 = vld [vmem:[#allocation5 + $0x38] sm:$0xff] }
  0xf5   :  { %v3237_v16 = vld [vmem:[%s3865_s6] ss:$0 sm:$0xff]  ;;  %s3633_s6 = smov 96  }
  0xf6   :  { %v691_v15 = vadd.f32 %v690_v7, %v678_v6  ;;  %v754_v20 = vmul.f32 %v3247_v0, %v753_v53  ;;  %v812_v22 = vpack.c.bf16 %v808_v19, %v804_v18  ;;  %v799_v7 = vld [vmem:[#allocation5 + $0x18] sm:$0xff] }
  0xf7   :  { %v3115_v53 = vld [vmem:[#allocation13 + $0x30] sm:$0xff] }
  0xf8   :  { %v2451_v21 = vmul.f32 -1.442695, %v691_v15  ;;  %v755_v27 = vadd.f32 %v3247_v0, %v754_v20  ;;  %1084 = vmatmul.bf16.vlgmr.msra.gmra.mxu0 %v812_v22  ;;  %v3114_v15 = vld [vmem:[#allocation13 + $0x28] sm:$0xff] }
  0xf9   :  { %1240 = vmatpush.bf16.msrb.mxu0 %v3115_v53 }
  0xfa   :  { %3248 = vpow2.f32 %v2451_v21  ;;  %v759_v33 = vsel %vm3797_vm6, %v3247_v0, %v755_v27  ;;  %v3112_v21 = vld [vmem:[#allocation13 + $0x18] sm:$0xff] }
  0xfb   :  { %v703_v26 = vpop.f32.mrf.mxu2  ;;  %v679_v29 = vpop.f32.mrf.mxu0  ;;  %v764_v35 = vsel %vm761_vm7, %v763_v24, %v759_v33  ;;  %v3111_v24 = vld [vmem:[#allocation13 + $0x10] sm:$0xff] }
  0xfc   :  { %v704_v28 = vadd.f32 %v703_v26, %v291_v17  ;;  %v716_v49 = vpop.f32.mrf.mxu3  ;;  %v692_v32 = vpop.f32.mrf.mxu1  ;;  %v805_v36 = vmul.f32 %v797_v30, %v764_v35  ;;  %v809_v37 = vmul.f32 %v801_v31, %v764_v35  ;;  %v3113_v17 = vld [vmem:[#allocation13 + $0x20] sm:$0xff]  ;;  %v3110_v26 = vld [vmem:[#allocation13 + $0x8] sm:$0xff] }
  0xfd   :  { %1241 = vmatpush.bf16.msrb.mxu0 %v3114_v15  ;;  %v3109_v32 = vld [vmem:[#allocation13] sm:$0xff] }
  0xfe   :  { %v717_v34 = vadd.f32 %v716_v49, %v704_v28  ;;  %v813_v40 = vpack.c.bf16 %v809_v37, %v805_v36 }
 0x100   :  { %v2452_v38 = vmul.f32 -1.442695, %v717_v34  ;;  %v3249_v39 = vpop.eup %3248  ;;  %1098 = vmatmul.bf16.vlgmr.msra.gmra.mxu1 %v813_v40 }
 0x101   :  { %v734_v41 = vadd.f32 1.0, %v3249_v39  ;;  %1242 = vmatpush.bf16.msrb.mxu0 %v3113_v17  ;;  %v3149_v17 = vld [vmem:[#allocation17 + $0xec] sm:$0xf0] }
 0x102   :  { %3250 = vpow2.f32 %v2452_v38 }
 0x103   :  { %v705_v42 = vpop.f32.mrf.mxu2  ;;  %3252 = vrcp.f32 %v734_v41  ;;  %v777_v50 = vand.u32 2147483648, %v734_v41  ;;  %v775_v52 = vand.u32 2147483647, %v734_v41  ;;  %vm771_vm9 = vweird.f32 %v734_v41 }
 0x104   :  { %v718_v43 = vpop.f32.mrf.mxu3 }
 0x105   :  { %v778_v57 = vor.u32 1.1754944e-38, %v777_v50  ;;  %vm776_vm11 = vcmp.eq.f32.partialorder %v775_v52, 8.507059e+37  ;;  %1243 = vmatpush.bf16.msrb.mxu0 %v3112_v21  ;;  %v2747_v21 = vld [vmem:[#allocation17 + $0xe8] sm:$0xf] }
 0x108   :  { %v3251_v44 = vpop.eup %3250 }
 0x109   :  { %v735_v45 = vadd.f32 1.0, %v3251_v44  ;;  %v3253_v46 = vpop.eup %3252  ;;  %1244 = vmatpush.bf16.msrb.mxu0 %v3111_v24 }
 0x10a   :  { %v767_v47 = vmul.f32 %v3253_v46, %v734_v41  ;;  %vm772_vm8 = vweird.f32 %v3253_v46 }
 0x10b   :  { %3254 = vrcp.f32 %v735_v45  ;;  %vm773_vm10 = vmor %vm771_vm9, %vm772_vm8  ;;  %v792_v1 = vand.u32 2147483648, %v735_v45  ;;  %v790_v3 = vand.u32 2147483647, %v735_v45  ;;  %vm786_vm13 = vweird.f32 %v735_v45 }
 0x10c   :  { %v768_v48 = vsub.f32 1.0, %v767_v47  ;;  %vm1286_vm8 = vcmask 261120  }
 0x10d   :  { %v793_v6 = vor.u32 1.1754944e-38, %v792_v1  ;;  %vm791_vm15 = vcmp.eq.f32.partialorder %v790_v3, 8.507059e+37  ;;  %1245 = vmatpush.bf16.msrb.mxu0 %v3110_v26  ;;  %v3117_v3 = vld [vmem:[#allocation16] sm:$0xff]  ;;  %v2749_v26 = vld [vmem:[#allocation17 + $0xf8] sm:$0xf0] }
 0x10e   :  { %v769_v51 = vmul.f32 %v3253_v46, %v768_v48 }
 0x110   :  { %v770_v55 = vadd.f32 %v3253_v46, %v769_v51 }
 0x111   :  { %v3255_v54 = vpop.eup %3254  ;;  %1246 = vmatpush.bf16.msrb.mxu0 %v3109_v32  ;;  %v2731_v32 = vld [vmem:[#allocation17 + $0xc8] sm:$0xf] }
 0x112   :  { %v782_v56 = vmul.f32 %v3255_v54, %v735_v45  ;;  %v774_v60 = vsel %vm773_vm10, %v3253_v46, %v770_v55  ;;  %vm787_vm12 = vweird.f32 %v3255_v54 }
 0x113   :  { %v779_v62 = vsel %vm776_vm11, %v778_v57, %v774_v60  ;;  %vm788_vm14 = vmor %vm786_vm13, %vm787_vm12 }
 0x114   :  { %v783_v61 = vsub.f32 1.0, %v782_v56  ;;  %v806_v63 = vmul.f32 %v798_v58, %v779_v62  ;;  %v810_v0 = vmul.f32 %v802_v59, %v779_v62 }
 0x116   :  { %v784_v2 = vmul.f32 %v3255_v54, %v783_v61  ;;  %v814_v4 = vpack.c.bf16 %v810_v0, %v806_v63 }
 0x118   :  { %v785_v5 = vadd.f32 %v3255_v54, %v784_v2  ;;  %1112 = vmatmul.bf16.vlgmr.msra.gmra.mxu2 %v814_v4  ;;  %v3118_v2 = vld [vmem:[#allocation16 + $0x8] sm:$0xff]  ;;  %v3238_v4 = vld [vmem:[#allocation14] ss:$0 sm:$0xff] }
 0x119   :  { %1296 = vmatpush.bf16.msrb.mxu1 %v3118_v2  ;;  %v3133_v2 = vld [vmem:[#allocation17 + $0x6c] sm:$0xf0] }
 0x11a   :  { %v789_v9 = vsel %vm788_vm14, %v3255_v54, %v785_v5 }
 0x11b   :  { %v794_v10 = vsel %vm791_vm15, %v793_v6, %v789_v9 }
 0x11c   :  { %v807_v11 = vmul.f32 %v799_v7, %v794_v10  ;;  %v811_v12 = vmul.f32 %v803_v8, %v794_v10 }
 0x11d   :  { %1297 = vmatpush.bf16.msrb.mxu1 %v3117_v3  ;;  %v3131_v3 = vld [vmem:[#allocation17 + $0x64] sm:$0xf] }
 0x11e   :  { %v815_v13 = vpack.c.bf16 %v811_v12, %v807_v11  ;;  %v1255_v12 = vld [vmem:[#allocation7] sm:$0xff] }
 0x120   :  { %1126 = vmatmul.bf16.vlgmr.msra.gmra.mxu3 %v815_v13 }
 0x175   :  { %v1085_v18 = vpop.f32.mrf.mxu0 }
 0x176   :  { %v1086_v20 = vadd.f32 %v3237_v16, %v1085_v18  ;;  %v3147_v18 = vld [vmem:[#allocation17 + $0xe4] sm:$0xf] }
 0x17d   :  { %v1099_v19 = vpop.f32.mrf.mxu1  ;;  %v1087_v27 = vpop.f32.mrf.mxu0 }
 0x17e   :  { %v1100_v23 = vadd.f32 %v1099_v19, %v1086_v20  ;;  %v1088_v30 = vadd.f32 %v3237_v16, %v1087_v27  ;;  %v2739_v16 = vld [vmem:[#allocation17 + $0xe0] sm:$0xf]  ;;  %v2741_v20 = vld [vmem:[#allocation17 + $0xf0] sm:$0xf0] }
 0x17f   :  { %v2740_v19 = vor.u32 %v3149_v17, %v2739_v16  ;;  %v2661_v16 = vld [vmem:[#allocation17 + $0x50] sm:$0xf0]  ;;  %v2667_v17 = vld [vmem:[#allocation17 + $0x48] sm:$0xf] }
 0x181   :  { %1525 = vmatpush.bf16.msrb.mxu2 %v2740_v19 }
 0x185   :  { %v1101_v29 = vpop.f32.mrf.mxu1 }
 0x186   :  { %v1102_v34 = vadd.f32 %v1101_v29, %v1088_v30  ;;  %v3143_v29 = vld [vmem:[#allocation17 + $0xc4] sm:$0xf] }
 0x19b   :  { %v1113_v22 = vpop.f32.mrf.mxu2 }
 0x19c   :  { %v1114_v25 = vadd.f32 %v1113_v22, %v1100_v23  ;;  %v3150_v22 = vld [vmem:[#allocation17 + $0xf4] sm:$0xf0]  ;;  %v2744_v23 = vor.u32 %v3147_v18, %v2741_v20 }
 0x19d   :  { %v2748_v24 = vor.u32 %v3150_v22, %v2747_v21  ;;  %v3130_v18 = vld [vmem:[#allocation17 + $0x54] sm:$0xf0]  ;;  %v3128_v21 = vld [vmem:[#allocation17 + $0x4c] sm:$0xf]  ;;  %v2669_v22 = vld [vmem:[#allocation17 + $0x58] sm:$0xf0] }
 0x19e   :  { %1538 = vmatpush.bf16.msrb.mxu3 %v2744_v23  ;;  %v2668_v20 = vor.u32 %v3130_v18, %v2667_v17  ;;  %v2672_v23 = vor.u32 %v3128_v21, %v2669_v22 }
 0x19f   :  { %1551 = vmatpush.bf16.msra.mxu1 %v2748_v24  ;;  %v2643_v24 = vld [vmem:[#allocation17 + $0x20] sm:$0xf] }
 0x1a3   :  { %v1127_v28 = vpop.f32.mrf.mxu3  ;;  %v1115_v33 = vpop.f32.mrf.mxu2 }
 0x1a4   :  { %v1128_v49 = vadd.f32 %v1127_v28, %v1114_v25  ;;  %v1116_v35 = vadd.f32 %v1115_v33, %v1102_v34  ;;  %v3148_v25 = vld [vmem:[#allocation17 + $0xec] sm:$0xf]  ;;  %v2723_v28 = vld [vmem:[#allocation17 + $0xc0] sm:$0xf]  ;;  %v3146_v33 = vld [vmem:[#allocation17 + $0xd4] sm:$0xf0] }
 0x1a5   :  { %v2752_v27 = vor.u32 %v3148_v25, %v2749_v26  ;;  %v3125_v25 = vld [vmem:[#allocation17 + $0x2c] sm:$0xf0]  ;;  %v3123_v26 = vld [vmem:[#allocation17 + $0x24] sm:$0xf] }
 0x1a6   :  { %v2581_v31 = vmul.f32 -1.442695, %v1128_v49  ;;  %v3145_v49 = vld [vmem:[#allocation17 + $0xcc] sm:$0xf0] }
 0x1a7   :  { %1564 = vmatpush.bf16.msra.mxu0 %v2752_v27  ;;  %v2724_v30 = vor.u32 %v3145_v49, %v2723_v28  ;;  %v2644_v27 = vor.u32 %v3125_v25, %v2643_v24  ;;  %v2645_v28 = vld [vmem:[#allocation17 + $0x30] sm:$0xf0]  ;;  %v2651_v49 = vld [vmem:[#allocation17 + $0x28] sm:$0xf] }
 0x1a8   :  { %3256 = vpow2.f32 %v2581_v31  ;;  %v2725_v31 = vld [vmem:[#allocation17 + $0xd0] sm:$0xf0] }
 0x1a9   :  { %v2728_v34 = vor.u32 %v3143_v29, %v2725_v31  ;;  %1526 = vmatpush.bf16.msrb.mxu2 %v2724_v30  ;;  %v3126_v29 = vld [vmem:[#allocation17 + $0x34] sm:$0xf0]  ;;  %v2648_v30 = vor.u32 %v3123_v26, %v2645_v28 }
 0x1aa   :  { %v2652_v31 = vor.u32 %v3126_v29, %v2651_v49 }
 0x1ab   :  { %v1129_v36 = vpop.f32.mrf.mxu3  ;;  %1539 = vmatpush.bf16.msrb.mxu3 %v2728_v34  ;;  %v2627_v34 = vld [vmem:[#allocation17] sm:$0xf] }
 0x1ac   :  { %v1130_v37 = vadd.f32 %v1129_v36, %v1116_v35  ;;  %v2732_v35 = vor.u32 %v3146_v33, %v2731_v32  ;;  %v3144_v36 = vld [vmem:[#allocation17 + $0xcc] sm:$0xf]  ;;  %v2653_v33 = vld [vmem:[#allocation17 + $0x38] sm:$0xf0] }
 0x1ad   :  { %v3124_v32 = vld [vmem:[#allocation17 + $0x2c] sm:$0xf] }
 0x1ae   :  { %v3257_v38 = vpop.eup %3256  ;;  %v2582_v39 = vmul.f32 -1.442695, %v1130_v37  ;;  %v2733_v37 = vld [vmem:[#allocation17 + $0xd8] sm:$0xf0]  ;;  %1552 = vmatpush.bf16.msra.mxu1 %v2732_v35  ;;  %v2656_v35 = vor.u32 %v3124_v32, %v2653_v33  ;;  %v3192_v32 = vld [vmem:[#allocation19 + $0x144] sm:$0xf0] }
 0x1af   :  { %v1138_v40 = vadd.f32 1.0, %v3257_v38  ;;  %v2736_v38 = vor.u32 %v3144_v36, %v2733_v37  ;;  %v3121_v36 = vld [vmem:[#allocation17 + $0xc] sm:$0xf0]  ;;  %v3119_v37 = vld [vmem:[#allocation17 + $0x4] sm:$0xf] }
 0x1b0   :  { %3258 = vpow2.f32 %v2582_v39  ;;  %v2707_v39 = vld [vmem:[#allocation17 + $0xa0] sm:$0xf] }
 0x1b1   :  { %3260 = vrcp.f32 %v1138_v40  ;;  %vm1145_vm1 = vweird.f32 %v1138_v40  ;;  %v1151_v52 = vand.u32 2147483648, %v1138_v40  ;;  %v1149_v55 = vand.u32 2147483647, %v1138_v40  ;;  %1565 = vmatpush.bf16.msra.mxu0 %v2736_v38  ;;  %v2629_v38 = vld [vmem:[#allocation17 + $0x10] sm:$0xf0] }
 0x1b3   :  { %v1152_v60 = vor.u32 1.1754944e-38, %v1151_v52  ;;  %vm1150_vm6 = vcmp.eq.f32.partialorder %v1149_v55, 8.507059e+37  ;;  %v2691_v52 = vld [vmem:[#allocation17 + $0x80] sm:$0xf]  ;;  %v3135_v55 = vld [vmem:[#allocation17 + $0x84] sm:$0xf] }
 0x1b6   :  { %v3259_v41 = vpop.eup %3258 }
 0x1b7   :  { %v3261_v42 = vpop.eup %3260  ;;  %v1139_v43 = vadd.f32 1.0, %v3259_v41  ;;  %v3139_v41 = vld [vmem:[#allocation17 + $0xa4] sm:$0xf] }
 0x1b8   :  { %v1141_v44 = vmul.f32 %v3261_v42, %v1138_v40  ;;  %vm1146_vm0 = vweird.f32 %v3261_v42  ;;  %v3141_v40 = vld [vmem:[#allocation17 + $0xac] sm:$0xf0] }
 0x1b9   :  { %3262 = vrcp.f32 %v1139_v43  ;;  %v1166_v54 = vand.u32 2147483648, %v1139_v43  ;;  %v1164_v57 = vand.u32 2147483647, %v1139_v43  ;;  %vm1147_vm3 = vmor %vm1145_vm1, %vm1146_vm0  ;;  %vm1160_vm4 = vweird.f32 %v1139_v43 }
 0x1ba   :  { %v1142_v45 = vsub.f32 1.0, %v1141_v44  ;;  %v2715_v44 = vld [vmem:[#allocation17 + $0xa8] sm:$0xf] }
 0x1bb   :  { %v1167_v61 = vor.u32 1.1754944e-38, %v1166_v54  ;;  %vm1165_vm7 = vcmp.eq.f32.partialorder %v1164_v57, 8.507059e+37  ;;  %v3137_v54 = vld [vmem:[#allocation17 + $0x8c] sm:$0xf0]  ;;  %v2693_v57 = vld [vmem:[#allocation17 + $0x90] sm:$0xf0] }
 0x1bc   :  { %v1143_v46 = vmul.f32 %v3261_v42, %v1142_v45  ;;  %v3142_v45 = vld [vmem:[#allocation17 + $0xb4] sm:$0xf0] }
 0x1be   :  { %v1144_v51 = vadd.f32 %v3261_v42, %v1143_v46 }
 0x1bf   :  { %v3263_v47 = vpop.eup %3262 }
 0x1c0   :  { %v1156_v48 = vmul.f32 %v3263_v47, %v1139_v43  ;;  %vm1161_vm2 = vweird.f32 %v3263_v47  ;;  %v1148_v58 = vsel %vm1147_vm3, %v3261_v42, %v1144_v51  ;;  %v2708_v42 = vor.u32 %v3141_v40, %v2707_v39  ;;  %v2709_v43 = vld [vmem:[#allocation17 + $0xb0] sm:$0xf0]  ;;  %v2635_v40 = vld [vmem:[#allocation17 + $0x8] sm:$0xf] }
 0x1c1   :  { %vm1162_vm5 = vmor %vm1160_vm4, %vm1161_vm2  ;;  %v1153_v63 = vsel %vm1150_vm6, %v1152_v60, %v1148_v58  ;;  %v2712_v46 = vor.u32 %v3139_v41, %v2709_v43  ;;  %v2699_v58 = vld [vmem:[#allocation17 + $0x88] sm:$0xf]  ;;  %v2696_v60 = vor.u32 %v3135_v55, %v2693_v57  ;;  %v2628_v39 = vor.u32 %v3121_v36, %v2627_v34  ;;  %v3122_v41 = vld [vmem:[#allocation17 + $0x14] sm:$0xf0] }
 0x1c2   :  { %v1157_v50 = vsub.f32 1.0, %v1156_v48  ;;  %v3140_v48 = vld [vmem:[#allocation17 + $0xac] sm:$0xf]  ;;  %1527 = vmatpush.bf16.msrb.mxu2 %v2708_v42  ;;  %v2632_v43 = vor.u32 %v3119_v37, %v2629_v38  ;;  %v3214_v57 = vld [vmem:[#allocation19 + $0x1f4] sm:$0xf0] }
 0x1c3   :  { %1540 = vmatpush.bf16.msrb.mxu3 %v2712_v46  ;;  %v3120_v42 = vld [vmem:[#allocation17 + $0xc] sm:$0xf]  ;;  %v3239_v46 = vld [vmem:[%s3869_s10] ss:$0 sm:$0xff]  ;;  %v2983_v34 = vld [vmem:[#allocation19 + $0x1c0] sm:$0xf] }
 0x1c4   :  { %v1158_v56 = vmul.f32 %v3263_v47, %v1157_v50  ;;  %v2717_v50 = vld [vmem:[#allocation17 + $0xb8] sm:$0xf0]  ;;  %v2799_v37 = vld [vmem:[#allocation19 + $0x50] sm:$0xf]  ;;  %v3162_v38 = vld [vmem:[#allocation19 + $0x54] sm:$0xf0] }
 0x1c5   :  { %v2720_v51 = vor.u32 %v3140_v48, %v2717_v50 }
 0x1c6   :  { %v1159_v59 = vadd.f32 %v3263_v47, %v1158_v56  ;;  %v2692_v56 = vor.u32 %v3137_v54, %v2691_v52  ;;  %v3198_v52 = vld [vmem:[#allocation19 + $0x174] sm:$0xf0]  ;;  %v3007_v54 = vld [vmem:[#allocation19 + $0x1f0] sm:$0xf] }
 0x1c7   :  { %1566 = vmatpush.bf16.msra.mxu0 %v2720_v51  ;;  %1541 = vmatpush.bf16.msrb.mxu3 %v2696_v60  ;;  %v2943_v51 = vld [vmem:[#allocation19 + $0x170] sm:$0xf]  ;;  %v3196_v60 = vld [vmem:[#allocation19 + $0x164] sm:$0xf0] }
 0x1c8   :  { %v1163_v62 = vsel %vm1162_vm5, %v3263_v47, %v1159_v59  ;;  %v2716_v47 = vor.u32 %v3142_v45, %v2715_v44  ;;  %v3138_v59 = vld [vmem:[#allocation17 + $0x94] sm:$0xf0]  ;;  %1528 = vmatpush.bf16.msrb.mxu2 %v2692_v56  ;;  %v2636_v44 = vor.u32 %v3122_v41, %v2635_v40  ;;  %v2637_v45 = vld [vmem:[#allocation17 + $0x18] sm:$0xf0]  ;;  %v2944_v56 = vor.u32 %v3198_v52, %v2943_v51  ;;  %v3160_v51 = vld [vmem:[#allocation19 + $0x44] sm:$0xf0] }
 0x1c9   :  { %v1168_v0 = vsel %vm1165_vm7, %v1167_v61, %v1163_v62  ;;  %v2700_v61 = vor.u32 %v3138_v59, %v2699_v58  ;;  %v3136_v62 = vld [vmem:[#allocation17 + $0x8c] sm:$0xf]  ;;  %v2935_v58 = vld [vmem:[#allocation19 + $0x160] sm:$0xf]  ;;  %v3008_v59 = vor.u32 %v3214_v57, %v3007_v54  ;;  %v2800_v40 = vor.u32 %v3162_v38, %v2799_v37  ;;  %v3178_v41 = vld [vmem:[#allocation19 + $0xd4] sm:$0xf0] }
 0x1ca   :  { %v1170_v1 = vpack.c.bf16 %v1168_v0, %v1153_v63  ;;  %1553 = vmatpush.bf16.msra.mxu1 %v2716_v47  ;;  %v2701_v63 = vld [vmem:[#allocation17 + $0x98] sm:$0xf0]  ;;  %v2640_v47 = vor.u32 %v3120_v42, %v2637_v45  ;;  %v2975_v45 = vld [vmem:[#allocation19 + $0x1b0] sm:$0xf]  ;;  %v2855_v52 = vld [vmem:[#allocation19 + $0xc0] sm:$0xf] }
 0x1cb   :  { %v2704_v0 = vor.u32 %v3136_v62, %v2701_v63  ;;  %v3212_v62 = vld [vmem:[#allocation19 + $0x1e4] sm:$0xf0]  ;;  %v2936_v63 = vor.u32 %v3196_v60, %v2935_v58  ;;  %v2903_v57 = vld [vmem:[#allocation19 + $0x120] sm:$0xf]  ;;  %v3001_v37 = vld [vmem:[#allocation19 + $0x1e8] sm:$0xf0] }
 0x1cc   :  { %1247 = vmatmul.bf16.vlgmr.msrb.gmra.mxu0 %v1170_v1  ;;  %v2675_v1 = vld [vmem:[#allocation17 + $0x60] sm:$0xf]  ;;  %v3188_v58 = vld [vmem:[#allocation19 + $0x124] sm:$0xf0] }
 0x1cd   :  { %1567 = vmatpush.bf16.msra.mxu0 %v2704_v0  ;;  %v2815_v0 = vld [vmem:[#allocation19 + $0x70] sm:$0xf]  ;;  %v2904_v60 = vor.u32 %v3188_v58, %v2903_v57  ;;  %v2759_v38 = vld [vmem:[#allocation19] sm:$0xf]  ;;  %v2993_v58 = vld [vmem:[#allocation19 + $0x1d8] sm:$0xf0] }
 0x1ce   :  { %1554 = vmatpush.bf16.msra.mxu1 %v2700_v61  ;;  %v2999_v61 = vld [vmem:[#allocation19 + $0x1e0] sm:$0xf] }
 0x249   :  { %v1248_v5 = vpop.f32.mrf.mxu0 }
 0x24a   :  { %v1249_v6 = vadd.f32 %v3238_v4, %v1248_v5  ;;  %v2677_v5 = vld [vmem:[#allocation17 + $0x70] sm:$0xf0] }
 0x24c   :  { %1253 = vst [vmem:[#allocation21] sm:$0xff] %v1249_v6 }
 0x251   :  { %v1250_v7 = vpop.f32.mrf.mxu0 }
 0x252   :  { %v1251_v8 = vadd.f32 %v3238_v4, %v1250_v7  ;;  %v2676_v4 = vor.u32 %v3133_v2, %v2675_v1  ;;  %v3134_v7 = vld [vmem:[#allocation17 + $0x74] sm:$0xf0]  ;;  %v2879_v2 = vld [vmem:[#allocation19 + $0xf0] sm:$0xf] }
 0x253   :  { %v3166_v1 = vld [vmem:[#allocation19 + $0x74] sm:$0xf0] }
 0x254   :  { %1254 = vst [vmem:[#allocation21 + $0x8] sm:$0xff] %v1251_v8  ;;  %v1256_v9 = vmul.f32 0.5, %v1251_v8  ;;  %v2680_v8 = vor.u32 %v3131_v3, %v2677_v5  ;;  %1529 = vmatpush.bf16.msrb.mxu2 %v2676_v4  ;;  %v3000_v3 = vor.u32 %v3212_v62, %v2999_v61  ;;  %v2816_v4 = vor.u32 %v3166_v1, %v2815_v0  ;;  %v3182_v5 = vld [vmem:[#allocation19 + $0xf4] sm:$0xf0]  ;;  %v3204_v61 = vld [vmem:[#allocation19 + $0x1a4] sm:$0xf0] }
 0x255   :  { %v3158_v0 = vld [vmem:[#allocation19 + $0x34] sm:$0xf0]  ;;  %v2847_v1 = vld [vmem:[#allocation19 + $0xb0] sm:$0xf] }
 0x256   :  { %v1257_v10 = vmul.f32 1.442695, %v1256_v9  ;;  %1542 = vmatpush.bf16.msrb.mxu3 %v2680_v8  ;;  %v2880_v8 = vor.u32 %v3182_v5, %v2879_v2  ;;  %v2895_v5 = vld [vmem:[#allocation19 + $0x110] sm:$0xf] }
 0x258   :  { %3264 = vpow2.f32 %v1257_v10  ;;  %v3132_v10 = vld [vmem:[#allocation17 + $0x6c] sm:$0xf] }
 0x25e   :  { %v3265_v11 = vpop.eup %3264 }
 0x25f   :  { %1260 = vrot.lane.b32.xlu0 %v3265_v11, %s3633_s6  ;;  %v2685_v11 = vld [vmem:[#allocation17 + $0x78] sm:$0xf0] }
 0x2d1   :  { %v1261_v13 = vpop.permute.xlu0 %1260 }
 0x2d2   :  { %v1263_v14 = vmul.f32 %v1261_v13, %v1255_v12  ;;  %v2688_v12 = vor.u32 %v3132_v10, %v2685_v11  ;;  %v2659_v13 = vld [vmem:[#allocation17 + $0x40] sm:$0xf]  ;;  %v3210_v10 = vld [vmem:[#allocation19 + $0x1d4] sm:$0xf0] }
 0x2d3   :  { %v2807_v11 = vld [vmem:[#allocation19 + $0x60] sm:$0xf] }
 0x2d4   :  { %v1264_v53 = vadd.f32 %v1263_v14, %v1249_v6  ;;  %v2683_v6 = vld [vmem:[#allocation17 + $0x68] sm:$0xf]  ;;  %v3129_v14 = vld [vmem:[#allocation17 + $0x4c] sm:$0xf0]  ;;  %1568 = vmatpush.bf16.msra.mxu0 %v2688_v12 }
 0x2d5   :  { %v2684_v9 = vor.u32 %v3134_v7, %v2683_v6  ;;  %v2927_v6 = vld [vmem:[#allocation19 + $0x150] sm:$0xf]  ;;  %v3194_v7 = vld [vmem:[#allocation19 + $0x154] sm:$0xf0] }
 0x2d6   :  { %v1265_v15 = vpack.c.bf16 %v1264_v53, %v1264_v53  ;;  %v3127_v53 = vld [vmem:[#allocation17 + $0x44] sm:$0xf] }
 0x2d7   :  { %1555 = vmatpush.bf16.msra.mxu1 %v2684_v9  ;;  %v2664_v19 = vor.u32 %v3127_v53, %v2661_v16  ;;  %v2991_v9 = vld [vmem:[#allocation19 + $0x1d0] sm:$0xf]  ;;  %v3180_v53 = vld [vmem:[#allocation19 + $0xe4] sm:$0xf0] }
 0x2d8   :  { %2623 = vmatmul.msk.bf16.vlgmr.msrb.gmra.mxu1 %vm1286_vm8, %v1265_v15  ;;  %v2660_v15 = vor.u32 %v3129_v14, %v2659_v13  ;;  %1569 = vmatpush.bf16.msra.mxu0 %v2672_v23  ;;  %v3164_v13 = vld [vmem:[#allocation19 + $0x64] sm:$0xf0]  ;;  %v2871_v14 = vld [vmem:[#allocation19 + $0xe0] sm:$0xf]  ;;  %v2992_v18 = vor.u32 %v3210_v10, %v2991_v9  ;;  %v3202_v9 = vld [vmem:[#allocation19 + $0x194] sm:$0xf0] }
 0x2d9   :  { %1543 = vmatpush.bf16.msrb.mxu3 %v2664_v19  ;;  %v2808_v16 = vor.u32 %v3164_v13, %v2807_v11  ;;  %v2872_v17 = vor.u32 %v3180_v53, %v2871_v14  ;;  %v2775_v11 = vld [vmem:[#allocation19 + $0x20] sm:$0xf]  ;;  %v3172_v53 = vld [vmem:[#allocation19 + $0xa4] sm:$0xf0] }
 0x2da   :  { %1530 = vmatpush.bf16.msrb.mxu2 %v2660_v15  ;;  %v2928_v15 = vor.u32 %v3194_v7, %v2927_v6  ;;  %v3186_v6 = vld [vmem:[#allocation19 + $0x114] sm:$0xf0]  ;;  %v2959_v7 = vld [vmem:[#allocation19 + $0x190] sm:$0xf]  ;;  %v2839_v13 = vld [vmem:[#allocation19 + $0xa0] sm:$0xf] }
 0x2db   :  { %1556 = vmatpush.bf16.msra.mxu1 %v2668_v20  ;;  %v2960_v10 = vor.u32 %v3202_v9, %v2959_v7  ;;  %v3161_v9 = vld [vmem:[#allocation19 + $0x54] sm:$0xf] }
 0x2dc   :  { %1570 = vmatpush.bf16.msra.mxu0 %v2656_v35  ;;  %v3208_v35 = vld [vmem:[#allocation19 + $0x1c4] sm:$0xf0] }
 0x2dd   :  { %1544 = vmatpush.bf16.msrb.mxu3 %v2648_v30  ;;  %v2984_v36 = vor.u32 %v3208_v35, %v2983_v34  ;;  %v2937_v34 = vld [vmem:[#allocation19 + $0x168] sm:$0xf0]  ;;  %v3211_v35 = vld [vmem:[#allocation19 + $0x1e4] sm:$0xf] }
 0x2de   :  { %1531 = vmatpush.bf16.msrb.mxu2 %v2644_v27 }
 0x2df   :  { %1557 = vmatpush.bf16.msra.mxu1 %v2652_v31  ;;  %v2919_v31 = vld [vmem:[#allocation19 + $0x140] sm:$0xf] }
 0x2e0   :  { %1571 = vmatpush.bf16.msra.mxu0 %v2640_v47  ;;  %v2920_v33 = vor.u32 %v3192_v32, %v2919_v31  ;;  %v3206_v47 = vld [vmem:[#allocation19 + $0x1b4] sm:$0xf0] }
 0x2e1   :  { %1545 = vmatpush.bf16.msrb.mxu3 %v2632_v43  ;;  %v2911_v43 = vld [vmem:[#allocation19 + $0x130] sm:$0xf] }
 0x2e2   :  { %1532 = vmatpush.bf16.msrb.mxu2 %v2628_v39  ;;  %v2863_v39 = vld [vmem:[#allocation19 + $0xd0] sm:$0xf] }
 0x2e3   :  { %1558 = vmatpush.bf16.msra.mxu1 %v2636_v44  ;;  %v2864_v42 = vor.u32 %v3178_v41, %v2863_v39  ;;  %v3190_v44 = vld [vmem:[#allocation19 + $0x134] sm:$0xf0]  ;;  %v3152_v39 = vld [vmem:[#allocation19 + $0x4] sm:$0xf0]  ;;  %v3004_v41 = vor.u32 %v3211_v35, %v3001_v37  ;;  %v2905_v35 = vld [vmem:[#allocation19 + $0x128] sm:$0xf0] }
 0x2e4   :  { %2086 = vmatpush.bf16.msrb.mxu0 %v3008_v59  ;;  %v2967_v59 = vld [vmem:[#allocation19 + $0x1a0] sm:$0xf] }
 0x2e5   :  { %2060 = vmatpush.bf16.msra.mxu3 %v2880_v8  ;;  %v2968_v62 = vor.u32 %v3204_v61, %v2967_v59  ;;  %v2896_v8 = vor.u32 %v3186_v6, %v2895_v5  ;;  %v2809_v61 = vld [vmem:[#allocation19 + $0x68] sm:$0xf0]  ;;  %v3207_v6 = vld [vmem:[#allocation19 + $0x1c4] sm:$0xf] }
 0x2e6   :  { %2047 = vmatpush.bf16.msra.mxu2 %v2816_v4  ;;  %v2921_v5 = vld [vmem:[#allocation19 + $0x148] sm:$0xf0] }
 0x2e7   :  { %2073 = vmatpush.bf16.msrb.mxu1 %v2944_v56 }
 0x2e8   :  { %2087 = vmatpush.bf16.msrb.mxu0 %v3000_v3  ;;  %v3174_v3 = vld [vmem:[#allocation19 + $0xb4] sm:$0xf0] }
 0x2e9   :  { %2061 = vmatpush.bf16.msra.mxu3 %v2872_v17  ;;  %v2848_v4 = vor.u32 %v3174_v3, %v2847_v1  ;;  %v3184_v17 = vld [vmem:[#allocation19 + $0x104] sm:$0xf0] }
 0x2ea   :  { %2048 = vmatpush.bf16.msra.mxu2 %v2808_v16  ;;  %v2887_v16 = vld [vmem:[#allocation19 + $0x100] sm:$0xf] }
 0x2eb   :  { %2074 = vmatpush.bf16.msrb.mxu1 %v2936_v63  ;;  %v2783_v63 = vld [vmem:[#allocation19 + $0x30] sm:$0xf] }
 0x2ec   :  { %2088 = vmatpush.bf16.msrb.mxu0 %v2992_v18  ;;  %v2784_v2 = vor.u32 %v3158_v0, %v2783_v63  ;;  %v2951_v18 = vld [vmem:[#allocation19 + $0x180] sm:$0xf] }
 0x2ed   :  { %2062 = vmatpush.bf16.msra.mxu3 %v2864_v42  ;;  %v2760_v42 = vor.u32 %v3152_v39, %v2759_v38 }
 0x2ee   :  { %2049 = vmatpush.bf16.msra.mxu2 %v2800_v40  ;;  %v3812_v40 = vld [vmem:[%s3871_s12] sm:$0xf]  ;;  %s3634_s12 = smov [#allocation21]  }
 0x2ef   :  { %2075 = vmatpush.bf16.msrb.mxu1 %v2928_v15  ;;  %v2840_v15 = vor.u32 %v3172_v53, %v2839_v13  ;;  %v1359_v63 = vperm.slane %v3812_v40, 2  ;;  %v1360_v0 = vperm.slane %v3812_v40, 3  ;;  %v3177_v13 = vld [vmem:[#allocation19 + $0xd4] sm:$0xf]  ;;  %v1357_v53 = vperm.slane %v3812_v40, 0  ;;  %s2168_s17 = sshll.u32 %s3634_s12, 4  ;;  %s2169_s17 = int_to_ptr.vmem [resolvable:$true] %s2168_s17 }
 0x2f0   :  { %2089 = vmatpush.bf16.msrb.mxu0 %v2984_v36  ;;  %2176 = dma.vmem_to_hbm [thread:$0]  %s2169_s17, 256, %s2171_s5, [#allocation22], %s3631_s11, %s3631_s11, %s3632_s27  }
 0x2f3   :  { %2076 = vmatpush.bf16.msrb.mxu1 %v2920_v33  ;;  %v3195_v33 = vld [vmem:[#allocation19 + $0x164] sm:$0xf] }
 0x2f4   :  { %v2940_v36 = vor.u32 %v3195_v33, %v2937_v34  ;;  %v3187_v34 = vld [vmem:[#allocation19 + $0x124] sm:$0xf] }
 0x2f5   :  { %v2908_v39 = vor.u32 %v3187_v34, %v2905_v35 }
 0x355   :  { %v1299_v48 = vpop.f32.mrf.mxu1 }
 0x356   :  { %v1300_v50 = vadd.f32 %v3239_v46, %v1299_v48  ;;  %v2912_v46 = vor.u32 %v3190_v44, %v2911_v43  ;;  %v2976_v48 = vor.u32 %v3206_v47, %v2975_v45  ;;  %v2823_v43 = vld [vmem:[#allocation19 + $0x80] sm:$0xf]  ;;  %v3168_v44 = vld [vmem:[#allocation19 + $0x84] sm:$0xf0]  ;;  %v3165_v45 = vld [vmem:[#allocation19 + $0x74] sm:$0xf] }
 0x357   :  { %v2817_v47 = vld [vmem:[#allocation19 + $0x78] sm:$0xf0] }
 0x358   :  { %v2624_v55 = vmul.f32 -1.442695, %v1300_v50  ;;  %v2791_v50 = vld [vmem:[#allocation19 + $0x40] sm:$0xf]  ;;  %2077 = vmatpush.bf16.msrb.mxu1 %v2912_v46  ;;  %2090 = vmatpush.bf16.msrb.mxu0 %v2976_v48  ;;  %v2824_v46 = vor.u32 %v3168_v44, %v2823_v43  ;;  %v3181_v48 = vld [vmem:[#allocation19 + $0xf4] sm:$0xf] }
 0x359   :  { %v2792_v54 = vor.u32 %v3160_v51, %v2791_v50  ;;  %v2881_v50 = vld [vmem:[#allocation19 + $0xf8] sm:$0xf0]  ;;  %v2820_v51 = vor.u32 %v3165_v45, %v2817_v47  ;;  %v3157_v44 = vld [vmem:[#allocation19 + $0x34] sm:$0xf] }
 0x35a   :  { %3266 = vpow2.f32 %v2624_v55  ;;  %v3176_v55 = vld [vmem:[#allocation19 + $0xc4] sm:$0xf0]  ;;  %v2785_v45 = vld [vmem:[#allocation19 + $0x38] sm:$0xf0] }
 0x35b   :  { %v2856_v56 = vor.u32 %v3176_v55, %v2855_v52  ;;  %2050 = vmatpush.bf16.msra.mxu2 %v2792_v54  ;;  %v2884_v52 = vor.u32 %v3181_v48, %v2881_v50  ;;  %v3193_v54 = vld [vmem:[#allocation19 + $0x154] sm:$0xf]  ;;  %v2929_v55 = vld [vmem:[#allocation19 + $0x158] sm:$0xf0]  ;;  %v2788_v47 = vor.u32 %v3157_v44, %v2785_v45 }
 0x35c   :  { %2078 = vmatpush.bf16.msrb.mxu1 %v2904_v60  ;;  %2091 = vmatpush.bf16.msrb.mxu0 %v2968_v62  ;;  %v2932_v57 = vor.u32 %v3193_v54, %v2929_v55  ;;  %v3163_v60 = vld [vmem:[#allocation19 + $0x64] sm:$0xf]  ;;  %v2849_v48 = vld [vmem:[#allocation19 + $0xb8] sm:$0xf0]  ;;  %v3185_v50 = vld [vmem:[#allocation19 + $0x114] sm:$0xf] }
 0x35d   :  { %v1301_v12 = vpop.f32.mrf.mxu1  ;;  %2063 = vmatpush.bf16.msra.mxu3 %v2856_v56  ;;  %v3209_v56 = vld [vmem:[#allocation19 + $0x1d4] sm:$0xf]  ;;  %v3179_v62 = vld [vmem:[#allocation19 + $0xe4] sm:$0xf]  ;;  %v2812_v1 = vor.u32 %v3163_v60, %v2809_v61  ;;  %v2961_v60 = vld [vmem:[#allocation19 + $0x198] sm:$0xf0] }
 0x35e   :  { %v3156_v12 = vld [vmem:[#allocation19 + $0x24] sm:$0xf0]  ;;  %v2996_v59 = vor.u32 %v3209_v56, %v2993_v58  ;;  %v3155_v61 = vld [vmem:[#allocation19 + $0x24] sm:$0xf] }
 0x35f   :  { %2051 = vmatpush.bf16.msra.mxu2 %v2784_v2  ;;  %v2776_v14 = vor.u32 %v3156_v12, %v2775_v11  ;;  %v2873_v2 = vld [vmem:[#allocation19 + $0xe8] sm:$0xf0] }
 0x360   :  { %v3267_v19 = vpop.eup %3266  ;;  %2079 = vmatpush.bf16.msrb.mxu1 %v2896_v8  ;;  %2092 = vmatpush.bf16.msrb.mxu0 %v2960_v10  ;;  %v2876_v3 = vor.u32 %v3179_v62, %v2873_v2  ;;  %v2985_v8 = vld [vmem:[#allocation19 + $0x1c8] sm:$0xf0]  ;;  %v2801_v10 = vld [vmem:[#allocation19 + $0x58] sm:$0xf0] }
 0x361   :  { %v1306_v20 = vadd.f32 1.0, %v3267_v19  ;;  %2064 = vmatpush.bf16.msra.mxu3 %v2848_v4  ;;  %v2888_v19 = vor.u32 %v3184_v17, %v2887_v16  ;;  %v3191_v4 = vld [vmem:[#allocation19 + $0x144] sm:$0xf]  ;;  %v2988_v11 = vor.u32 %v3207_v6, %v2985_v8  ;;  %v2804_v12 = vor.u32 %v3161_v9, %v2801_v10  ;;  %v2777_v62 = vld [vmem:[#allocation19 + $0x28] sm:$0xf0] }
 0x362   :  { %v2924_v7 = vor.u32 %v3191_v4, %v2921_v5  ;;  %v2841_v2 = vld [vmem:[#allocation19 + $0xa8] sm:$0xf0] }
 0x363   :  { %3268 = vrcp.f32 %v1306_v20  ;;  %v1318_v24 = vand.u32 2147483648, %v1306_v20  ;;  %v1316_v26 = vand.u32 2147483647, %v1306_v20  ;;  %vm1312_vm10 = vweird.f32 %v1306_v20  ;;  %2052 = vmatpush.bf16.msra.mxu2 %v2776_v14  ;;  %v2865_v14 = vld [vmem:[#allocation19 + $0xd8] sm:$0xf0] }
 0x364   :  { %2080 = vmatpush.bf16.msrb.mxu1 %v2888_v19  ;;  %v2913_v19 = vld [vmem:[#allocation19 + $0x138] sm:$0xf0]  ;;  %v2889_v6 = vld [vmem:[#allocation19 + $0x108] sm:$0xf0] }
 0x365   :  { %v1319_v28 = vor.u32 1.1754944e-38, %v1318_v24  ;;  %vm1317_vm12 = vcmp.eq.f32.partialorder %v1316_v26, 8.507059e+37  ;;  %2065 = vmatpush.bf16.msra.mxu3 %v2840_v15  ;;  %v3009_v26 = vld [vmem:[#allocation19 + $0x1f8] sm:$0xf0]  ;;  %v2868_v15 = vor.u32 %v3177_v13, %v2865_v14  ;;  %v2953_v8 = vld [vmem:[#allocation19 + $0x188] sm:$0xf0] }
 0x366   :  { %v3153_v13 = vld [vmem:[#allocation19 + $0x14] sm:$0xf]  ;;  %v2769_v14 = vld [vmem:[#allocation19 + $0x18] sm:$0xf0] }
 0x369   :  { %v3269_v21 = vpop.eup %3268 }
 0x36a   :  { %v1308_v22 = vmul.f32 %v3269_v21, %v1306_v20  ;;  %vm1313_vm9 = vweird.f32 %v3269_v21  ;;  %v3200_v20 = vld [vmem:[#allocation19 + $0x184] sm:$0xf0] }
 0x36b   :  { %vm1314_vm11 = vmor %vm1312_vm10, %vm1313_vm9 }
 0x36c   :  { %v1309_v23 = vsub.f32 1.0, %v1308_v22  ;;  %v2945_v22 = vld [vmem:[#allocation19 + $0x178] sm:$0xf0] }
 0x36e   :  { %v1310_v25 = vmul.f32 %v3269_v21, %v1309_v23  ;;  %v2952_v23 = vor.u32 %v3200_v20, %v2951_v18  ;;  %v3189_v18 = vld [vmem:[#allocation19 + $0x134] sm:$0xf] }
 0x36f   :  { %v3205_v20 = vld [vmem:[#allocation19 + $0x1b4] sm:$0xf] }
 0x370   :  { %v1311_v27 = vadd.f32 %v3269_v21, %v1310_v25  ;;  %v3213_v25 = vld [vmem:[#allocation19 + $0x1f4] sm:$0xf]  ;;  %2093 = vmatpush.bf16.msrb.mxu0 %v2952_v23  ;;  %v1358_v23 = vperm.slane %v3812_v40, 1  ;;  %v2969_v40 = vld [vmem:[#allocation19 + $0x1a8] sm:$0xf0] }
 0x372   :  { %v1315_v49 = vsel %vm1314_vm11, %v3269_v21, %v1311_v27  ;;  %v3197_v21 = vld [vmem:[#allocation19 + $0x174] sm:$0xf]  ;;  %v2767_v27 = vld [vmem:[#allocation19 + $0x10] sm:$0xf] }
 0x373   :  { %v1320_v29 = vsel %vm1317_vm12, %v1319_v28, %v1315_v49  ;;  %v2948_v24 = vor.u32 %v3197_v21, %v2945_v22  ;;  %v3012_v28 = vor.u32 %v3213_v25, %v3009_v26  ;;  %v3154_v49 = vld [vmem:[#allocation19 + $0x14] sm:$0xf0]  ;;  %v2977_v25 = vld [vmem:[#allocation19 + $0x1b8] sm:$0xf0] }
 0x374   :  { %v1322_v30 = vpack.c.bf16 %v1320_v29, %v1320_v29  ;;  %v2831_v29 = vld [vmem:[#allocation19 + $0x90] sm:$0xf]  ;;  %v2768_v31 = vor.u32 %v3154_v49, %v2767_v27  ;;  %v2980_v26 = vor.u32 %v3205_v20, %v2977_v25  ;;  %v3159_v27 = vld [vmem:[#allocation19 + $0x44] sm:$0xf] }
 0x375   :  { %v3175_v49 = vld [vmem:[#allocation19 + $0xc4] sm:$0xf] }
 0x376   :  { %1533 = vmatmul.bf16.vlgmr.msrb.gmra.mxu2 %v1322_v30  ;;  %1546 = vmatmul.bf16.vlgmr.msrb.gmra.mxu3 %v1322_v30  ;;  %v3151_v25 = vld [vmem:[#allocation19 + $0x4] sm:$0xf] }
 0x377   :  { %1559 = vmatmul.bf16.vlgmr.msra.gmra.mxu1 %v1322_v30  ;;  %1572 = vmatmul.bf16.vlgmr.msra.gmra.mxu0 %v1322_v30  ;;  %v3170_v30 = vld [vmem:[#allocation19 + $0x94] sm:$0xf0] }
 0x378   :  { %2125 = vmatpush.bf16.msra.mxu1 %v2948_v24  ;;  %v2832_v32 = vor.u32 %v3170_v30, %v2831_v29  ;;  %2138 = vmatpush.bf16.msra.mxu0 %v3012_v28  ;;  %v2916_v24 = vor.u32 %v3189_v18, %v2913_v19  ;;  %v2793_v28 = vld [vmem:[#allocation19 + $0x48] sm:$0xf0]  ;;  %v2833_v18 = vld [vmem:[#allocation19 + $0x98] sm:$0xf0]  ;;  %v2772_v19 = vor.u32 %v3153_v13, %v2769_v14 }
 0x379   :  { %2053 = vmatpush.bf16.msra.mxu2 %v2768_v31  ;;  %v2796_v31 = vor.u32 %v3159_v27, %v2793_v28  ;;  %v2761_v27 = vld [vmem:[#allocation19 + $0x8] sm:$0xf0]  ;;  %v3167_v28 = vld [vmem:[#allocation19 + $0x84] sm:$0xf] }
 0x37a   :  { %2066 = vmatpush.bf16.msra.mxu3 %v2832_v32  ;;  %v2857_v32 = vld [vmem:[#allocation19 + $0xc8] sm:$0xf0] }
 0x37b   :  { %v2860_v33 = vor.u32 %v3175_v49, %v2857_v32  ;;  %v2825_v49 = vld [vmem:[#allocation19 + $0x88] sm:$0xf0] }
 0x37c   :  { %2126 = vmatpush.bf16.msra.mxu1 %v2940_v36  ;;  %2139 = vmatpush.bf16.msra.mxu0 %v3004_v41  ;;  %v3203_v36 = vld [vmem:[#allocation19 + $0x1a4] sm:$0xf] }
 0x37d   :  { %2054 = vmatpush.bf16.msra.mxu2 %v2760_v42  ;;  %v2972_v43 = vor.u32 %v3203_v36, %v2969_v40 }
 0x37e   :  { %2067 = vmatpush.bf16.msra.mxu3 %v2824_v46  ;;  %v3173_v46 = vld [vmem:[#allocation19 + $0xb4] sm:$0xf] }
 0x380   :  { %2127 = vmatpush.bf16.msra.mxu1 %v2932_v57  ;;  %2140 = vmatpush.bf16.msra.mxu0 %v2996_v59  ;;  %v2852_v57 = vor.u32 %v3173_v46, %v2849_v48  ;;  %v3201_v59 = vld [vmem:[#allocation19 + $0x194] sm:$0xf] }
 0x381   :  { %2099 = vmatpush.bf16.msrb.mxu2 %v2820_v51  ;;  %v2897_v51 = vld [vmem:[#allocation19 + $0x118] sm:$0xf0] }
 0x382   :  { %2112 = vmatpush.bf16.msrb.mxu3 %v2884_v52  ;;  %v2900_v58 = vor.u32 %v3185_v50, %v2897_v51 }
 0x384   :  { %2128 = vmatpush.bf16.msra.mxu1 %v2924_v7  ;;  %2141 = vmatpush.bf16.msra.mxu0 %v2988_v11  ;;  %v3199_v7 = vld [vmem:[#allocation19 + $0x184] sm:$0xf] }
 0x385   :  { %2100 = vmatpush.bf16.msrb.mxu2 %v2812_v1  ;;  %v3171_v1 = vld [vmem:[#allocation19 + $0xa4] sm:$0xf] }
 0x386   :  { %2113 = vmatpush.bf16.msrb.mxu3 %v2876_v3  ;;  %v3183_v3 = vld [vmem:[#allocation19 + $0x104] sm:$0xf]  ;;  %v2844_v5 = vor.u32 %v3171_v1, %v2841_v2 }
 0x387   :  { %v2892_v11 = vor.u32 %v3183_v3, %v2889_v6 }
 0x388   :  { %2129 = vmatpush.bf16.msra.mxu1 %v2916_v24  ;;  %2142 = vmatpush.bf16.msra.mxu0 %v2980_v26 }
 0x389   :  { %2101 = vmatpush.bf16.msrb.mxu2 %v2804_v12  ;;  %v2956_v12 = vor.u32 %v3199_v7, %v2953_v8 }
 0x38a   :  { %2114 = vmatpush.bf16.msrb.mxu3 %v2868_v15 }
 0x38c   :  { %2130 = vmatpush.bf16.msra.mxu1 %v2908_v39  ;;  %2143 = vmatpush.bf16.msra.mxu0 %v2972_v43 }
 0x38d   :  { %2102 = vmatpush.bf16.msrb.mxu2 %v2796_v31 }
 0x38e   :  { %2115 = vmatpush.bf16.msrb.mxu3 %v2860_v33 }
 0x390   :  { %2131 = vmatpush.bf16.msra.mxu1 %v2900_v58 }
 0x391   :  { %2103 = vmatpush.bf16.msrb.mxu2 %v2788_v47 }
 0x392   :  { %2116 = vmatpush.bf16.msrb.mxu3 %v2852_v57 }
 0x394   :  { %2132 = vmatpush.bf16.msra.mxu1 %v2892_v11 }
 0x396   :  { %2117 = vmatpush.bf16.msrb.mxu3 %v2844_v5 }
 0x3f4   :  { %v1560_v16 = vpop.f32.mrf.mxu1  ;;  %v1573_v17 = vpop.f32.mrf.mxu0 }
 0x3f5   :  { %v1561_v21 = vadd.f32 %v1560_v16, %v1359_v63  ;;  %v1574_v22 = vadd.f32 %v1573_v17, %v1360_v0  ;;  %v2964_v63 = vor.u32 %v3201_v59, %v2961_v60  ;;  %v2780_v0 = vor.u32 %v3155_v61, %v2777_v62  ;;  %v3169_v17 = vld [vmem:[#allocation19 + $0x94] sm:$0xf] }
 0x3f7   :  { %v2755_v29 = vmul.f32 -1.442695, %v1561_v21  ;;  %v2756_v30 = vmul.f32 -1.442695, %v1574_v22  ;;  %2144 = vmatpush.bf16.msra.mxu0 %v2964_v63  ;;  %2104 = vmatpush.bf16.msrb.mxu2 %v2780_v0  ;;  %v2836_v21 = vor.u32 %v3169_v17, %v2833_v18 }
 0x3f9   :  { %3270 = vpow2.f32 %v2755_v29  ;;  %v1534_v37 = vpop.f32.mrf.mxu2  ;;  %v1547_v38 = vpop.f32.mrf.mxu3  ;;  %2118 = vmatpush.bf16.msrb.mxu3 %v2836_v21 }
 0x3fa   :  { %3272 = vpow2.f32 %v2756_v30  ;;  %v1535_v41 = vadd.f32 %v1534_v37, %v1357_v53  ;;  %v1548_v42 = vadd.f32 %v1547_v38, %v1358_v23  ;;  %v2764_v37 = vor.u32 %v3151_v25, %v2761_v27 }
 0x3fb   :  { %2145 = vmatpush.bf16.msra.mxu0 %v2956_v12  ;;  %2105 = vmatpush.bf16.msrb.mxu2 %v2772_v19  ;;  %v2828_v38 = vor.u32 %v3167_v28, %v2825_v49 }
 0x3fc   :  { %v2753_v52 = vmul.f32 -1.442695, %v1535_v41  ;;  %v2754_v54 = vmul.f32 -1.442695, %v1548_v42  ;;  %v1562_v55 = vpop.f32.mrf.mxu1  ;;  %v1575_v56 = vpop.f32.mrf.mxu0 }
 0x3fd   :  { %2119 = vmatpush.bf16.msrb.mxu3 %v2828_v38 }
 0x3fe   :  { %3274 = vpow2.f32 %v2753_v52 }
 0x3ff   :  { %v3271_v4 = vpop.eup %3270  ;;  %3276 = vpow2.f32 %v2754_v54  ;;  %2106 = vmatpush.bf16.msrb.mxu2 %v2764_v37 }
 0x400   :  { %v3273_v9 = vpop.eup %3272  ;;  %v1591_v10 = vadd.f32 1.0, %v3271_v4 }
 0x401   :  { %v1592_v53 = vadd.f32 1.0, %v3273_v9  ;;  %v1536_v15 = vpop.f32.mrf.mxu2  ;;  %v1549_v16 = vpop.f32.mrf.mxu3 }
 0x402   :  { %3278 = vrcp.f32 %v1591_v10  ;;  %v1632_v31 = vand.u32 2147483647, %v1591_v10  ;;  %v1634_v33 = vand.u32 2147483648, %v1591_v10  ;;  %vm1628_vm13 = vweird.f32 %v1591_v10  ;;  %v1721_v15 = vld [vmem:[%s3873_s14] sm:$0x3]  ;;  %s3635_s14 = smov [#allocation20]  }
 0x403   :  { %3280 = vrcp.f32 %v1592_v53  ;;  %v1647_v34 = vand.u32 2147483647, %v1592_v53  ;;  %v1649_v36 = vand.u32 2147483648, %v1592_v53  ;;  %vm1643_vm0 = vweird.f32 %v1592_v53  ;;  %s2158_s16 = sshll.u32 %s3635_s14, 4  ;;  %s2159_s16 = int_to_ptr.vmem [resolvable:$true] %s2158_s16 }
 0x404   :  { %v3275_v20 = vpop.eup %3274  ;;  %vm3824_vm15 = vcmp.eq.f32.partialorder %v1632_v31, 8.507059e+37  ;;  %v1635_v45 = vor.u32 1.1754944e-38, %v1634_v33  ;;  %v1723_v17 = vperm.slane %v1721_v15, 0 }
 0x405   :  { %v3277_v22 = vpop.eup %3276  ;;  %v3818_v23 = vadd.f32 1.0, %v3275_v20  ;;  %vm3830_vm2 = vcmp.eq.f32.partialorder %v1647_v34, 8.507059e+37  ;;  %v1650_v51 = vor.u32 1.1754944e-38, %v1649_v36 }
 0x406   :  { %v3820_v24 = vadd.f32 1.0, %v3277_v22 }
 0x407   :  { %3282 = vrcp.f32 %v3818_v23  ;;  %v1602_v55 = vand.u32 2147483647, %v3818_v23  ;;  %v1604_v56 = vand.u32 2147483648, %v3818_v23  ;;  %vm1598_vm7 = vweird.f32 %v3818_v23 }
 0x408   :  { %v3279_v26 = vpop.eup %3278  ;;  %3284 = vrcp.f32 %v3820_v24  ;;  %v1617_v59 = vand.u32 2147483647, %v3820_v24  ;;  %v1619_v60 = vand.u32 2147483648, %v3820_v24  ;;  %vm1613_vm9 = vweird.f32 %v3820_v24 }
 0x409   :  { %v3281_v29 = vpop.eup %3280  ;;  %v1624_v30 = vmul.f32 %v3279_v26, %v1591_v10  ;;  %vm1629_vm14 = vweird.f32 %v3279_v26  ;;  %v1605_v5 = vor.u32 1.1754944e-38, %v1604_v56  ;;  %vm1603_vm10 = vcmp.eq.f32.partialorder %v1602_v55, 8.507059e+37 }
 0x40a   :  { %v1639_v32 = vmul.f32 %v3281_v29, %v1592_v53  ;;  %vm1644_vm1 = vweird.f32 %v3281_v29  ;;  %vm1630_vm3 = vmor %vm1628_vm13, %vm1629_vm14  ;;  %v1620_v8 = vor.u32 1.1754944e-38, %v1619_v60  ;;  %vm1618_vm12 = vcmp.eq.f32.partialorder %v1617_v59, 8.507059e+37 }
 0x40b   :  { %v1625_v35 = vsub.f32 1.0, %v1624_v30  ;;  %vm1645_vm4 = vmor %vm1643_vm0, %vm1644_vm1 }
 0x40c   :  { %v1640_v39 = vsub.f32 1.0, %v1639_v32 }
 0x40d   :  { %v3283_v40 = vpop.eup %3282  ;;  %v1626_v41 = vmul.f32 %v3279_v26, %v1625_v35 }
 0x40e   :  { %v3285_v43 = vpop.eup %3284  ;;  %v1594_v44 = vmul.f32 %v3283_v40, %v3818_v23  ;;  %v1641_v46 = vmul.f32 %v3281_v29, %v1640_v39  ;;  %vm1599_vm5 = vweird.f32 %v3283_v40 }
 0x40f   :  { %v1609_v47 = vmul.f32 %v3285_v43, %v3820_v24  ;;  %v1627_v48 = vadd.f32 %v3279_v26, %v1626_v41  ;;  %vm1614_vm6 = vweird.f32 %v3285_v43  ;;  %vm1600_vm8 = vmor %vm1598_vm7, %vm1599_vm5 }
 0x410   :  { %v1595_v52 = vsub.f32 1.0, %v1594_v44  ;;  %v1642_v54 = vadd.f32 %v3281_v29, %v1641_v46  ;;  %vm1615_vm11 = vmor %vm1613_vm9, %vm1614_vm6 }
 0x411   :  { %v1610_v57 = vsub.f32 1.0, %v1609_v47  ;;  %v1631_v58 = vsel %vm1630_vm3, %v3279_v26, %v1627_v48 }
 0x412   :  { %v1636_v61 = vsel %vm3824_vm15, %v1635_v45, %v1631_v58  ;;  %v1646_v62 = vsel %vm1645_vm4, %v3281_v29, %v1642_v54  ;;  %v1596_v63 = vmul.f32 %v3283_v40, %v1595_v52  ;;  %v1724_v29 = vperm.slane %v1721_v15, 1 }
 0x413   :  { %v1655_v0 = vpack.c.bf16 %v1636_v61, %v1636_v61  ;;  %v1651_v1 = vsel %vm3830_vm2, %v1650_v51, %v1646_v62  ;;  %v1611_v2 = vmul.f32 %v3285_v43, %v1610_v57 }
 0x414   :  { %v1656_v3 = vpack.c.bf16 %v1651_v1, %v1651_v1  ;;  %v1597_v4 = vadd.f32 %v3283_v40, %v1596_v63 }
 0x415   :  { %2081 = vmatmul.bf16.vlgmr.msrb.gmra.mxu1 %v1655_v0  ;;  %v1612_v6 = vadd.f32 %v3285_v43, %v1611_v2 }
 0x416   :  { %2094 = vmatmul.bf16.vlgmr.msrb.gmra.mxu0 %v1656_v3  ;;  %v1601_v7 = vsel %vm1600_vm8, %v3283_v40, %v1597_v4 }
 0x417   :  { %v1606_v9 = vsel %vm1603_vm10, %v1605_v5, %v1601_v7  ;;  %v1616_v10 = vsel %vm1615_vm11, %v3285_v43, %v1612_v6 }
 0x418   :  { %v1653_v11 = vpack.c.bf16 %v1606_v9, %v1606_v9  ;;  %v1621_v12 = vsel %vm1618_vm12, %v1620_v8, %v1616_v10 }
 0x419   :  { %v1654_v13 = vpack.c.bf16 %v1621_v12, %v1621_v12 }
 0x41a   :  { %2055 = vmatmul.bf16.vlgmr.msra.gmra.mxu2 %v1653_v11 }
 0x41b   :  { %2068 = vmatmul.bf16.vlgmr.msra.gmra.mxu3 %v1654_v13 }
 0x425   :  { %2133 = vmatmul.bf16.vlgmr.msra.gmra.mxu1 %v1655_v0 }
 0x426   :  { %2146 = vmatmul.bf16.vlgmr.msra.gmra.mxu0 %v1656_v3 }
 0x42a   :  { %2107 = vmatmul.bf16.vlgmr.msrb.gmra.mxu2 %v1653_v11 }
 0x42b   :  { %2120 = vmatmul.bf16.vlgmr.msrb.gmra.mxu3 %v1654_v13 }
 0x492   :  { %v2082_v14 = vpop.f32.mrf.mxu1 }
 0x493   :  { %v2095_v53 = vpop.f32.mrf.mxu0 }
 0x49a   :  { %v2084_v16 = vpop.f32.mrf.mxu1 }
 0x49b   :  { %v2097_v18 = vpop.f32.mrf.mxu0 }
 0x49d   :  { %v2056_v19 = vpop.f32.mrf.mxu2 }
 0x49e   :  { %v2057_v20 = vadd.f32 %v2056_v19, %v1723_v17  ;;  %v2069_v21 = vpop.f32.mrf.mxu3 }
 0x4a0   :  { %v2070_v22 = vadd.f32 %v2069_v21, %v2057_v20 }
 0x4a2   :  { %v2083_v23 = vadd.f32 %v2082_v14, %v2070_v22  ;;  %v2134_v24 = vpop.f32.mrf.mxu1 }
 0x4a3   :  { %v2147_v25 = vpop.f32.mrf.mxu0 }
 0x4a4   :  { %v2096_v26 = vadd.f32 %v2095_v53, %v2083_v23 }
 0x4a5   :  { %v2058_v27 = vpop.f32.mrf.mxu2 }
 0x4a6   :  { %2151 = vst [vmem:[#allocation20] sm:$0xff] %v2096_v26  ;;  %v2071_v28 = vpop.f32.mrf.mxu3 }
 0x4aa   :  { %v2136_v49 = vpop.f32.mrf.mxu1 }
 0x4ab   :  { %v2149_v30 = vpop.f32.mrf.mxu0 }
 0x4ad   :  { %v2108_v31 = vpop.f32.mrf.mxu2 }
 0x4ae   :  { %v2109_v32 = vadd.f32 %v2108_v31, %v1724_v29  ;;  %v2121_v33 = vpop.f32.mrf.mxu3 }
 0x4b0   :  { %v2122_v34 = vadd.f32 %v2121_v33, %v2109_v32 }
 0x4b2   :  { %v2135_v35 = vadd.f32 %v2134_v24, %v2122_v34 }
 0x4b4   :  { %v2148_v36 = vadd.f32 %v2147_v25, %v2135_v35 }
 0x4b5   :  { %v2110_v37 = vpop.f32.mrf.mxu2 }
 0x4b6   :  { %2152 = vst [vmem:[#allocation20 + $0x8] sm:$0xff] %v2148_v36  ;;  %v2123_v38 = vpop.f32.mrf.mxu3 }
 0x4b7   :  { %2163 = dma.vmem_to_hbm [thread:$0]  %s2159_s16, 256, %s2161_s22, [#allocation4]  }
 0x4b8   :  { %3610 = dma.done.wait [#allocation4], 256  }
 0x4b9   :  { %3611 = vsyncadd [#allocation4], 4294967040 }
 0x4ba   :  { %3612 = dma.done.wait [#allocation22], 256  }
 0x4bb   :  { %3613 = vsyncadd [#allocation22], 4294967040 }
 0x4bc   :  { %2185 = vsyncpa [#allocation3], 1 }
 0x4bd   :  { %2186 = vsyncpa [#allocation6], 1 }
 0x4be   :  { %2187 = vsyncpa [#allocation9], 1 }
 0x4bf   :  { %2188 = vsyncpa [#allocation12], 1 }
 0x4c0   :  { %2189 = vsyncpa [#allocation15], 1 }
 0x4c1   :  { %2190 = vsyncpa [#allocation18], 1 }
 0x4c2   :  { %2191 = vsyncpa [#allocation4], 1 }
 0x4c3   :  { %2192 = vsyncpa [#allocation22], 1 }

</bundles_post_ra>
